<compile_context>
chip_gen: v7x
topology: tpu7x:2x2x1
jax: 0.10.0
libtpu: 0.0.40
codegen_flags: <defaults>
</compile_context>

<pallas_src>
import numpy as np
import jax
import jax.numpy as jnp
from jax.experimental import pallas as pl
from jax.experimental.pallas import tpu as pltpu


# ----------------------------------------------------------------------------
# Pallas kernel: one tile of TILE_T independent decoding steps per grid step.
# ----------------------------------------------------------------------------
def decoder_tile_kernel(x_ref, h0_ref, hh_ref, enc_ref, valid_ref, story_ref,
                        wih_ref, bih_ref, et_ref, wr_ref, br_ref,
                        pfinal_ref, ctx0_ref):
    B, TT, D = x_ref.shape
    S = enc_ref.shape[1]
    V = et_ref.shape[1]
    R = B * TT                                   # folded rows: (b, t) batch-major
    f32 = jnp.float32

    x = x_ref[...].reshape(R, D)                                       # (R, D)
    h0 = jnp.broadcast_to(h0_ref[...][:, None, :], (B, TT, D)).reshape(R, D)
    hh = jnp.broadcast_to(hh_ref[...][:, None, :], (B, TT, 3 * D)).reshape(R, 3 * D)

    # --- GRU cell (PyTorch gate order r|z|n), input-side projection fused ---
    gi = jnp.dot(x, wih_ref[...], preferred_element_type=f32) + bih_ref[...]  # (R,3D)
    r = jax.nn.sigmoid(gi[:, 0:D] + hh[:, 0:D])
    z = jax.nn.sigmoid(gi[:, D:2 * D] + hh[:, D:2 * D])
    n = jnp.tanh(gi[:, 2 * D:3 * D] + r * hh[:, 2 * D:3 * D])
    h = (1.0 - z) * n + z * h0                                         # (R, D)

    # --- attention over encoded outputs (batched MXU contractions) ---
    enc = enc_ref[...]                                                 # (B, S, D)
    h3 = h.reshape(B, TT, D)
    scores = jnp.einsum('btd,bsd->bts', h3, enc,
                        preferred_element_type=f32)                    # (B, TT, S)
    valid = valid_ref[...][:, None, :]                                 # (B, 1, S)
    s_soft = scores + (valid - 1.0) * 1e30                             # big-neg mask
    m = jnp.max(s_soft, axis=-1, keepdims=True)
    e = jnp.exp(s_soft - m)
    probs = e * pl.reciprocal(jnp.sum(e, axis=-1, keepdims=True), approx=True)
    # original quirk: context weighted by raw (masked) scores, not softmax probs
    context = jnp.einsum('bts,bsd->btd', scores * valid, enc,
                         preferred_element_type=f32)                   # (B, TT, D)

    # first decoding step of this tile (tile 0's is used for the slot gate)
    ctx0_ref[0] = context[:, 0, :]

    # --- vocab distribution p_vocab = softmax(h @ E^T) ---
    logits = jnp.dot(h, et_ref[...], preferred_element_type=f32)       # (R, V)
    mv = jnp.max(logits, axis=-1, keepdims=True)
    ev = jnp.exp(logits - mv)
    p_vocab = ev * pl.reciprocal(jnp.sum(ev, axis=-1, keepdims=True), approx=True)

    # --- p_gen = sigmoid(W [h; ctx; x] + b), single fused (R,3D)@(3D,1) matmul ---
    ctx2 = context.reshape(R, D)
    pg_in = jnp.concatenate([h, ctx2, x], axis=1)                      # (R, 3D)
    p_gen = jax.nn.sigmoid(
        jnp.dot(pg_in, wr_ref[...], preferred_element_type=f32) + br_ref[0, 0])  # (R,1)

    # --- scatter_add of attention probs onto vocab ids: S-step accumulation ---
    # (keeps live data at (B, TT, V); no (B, S, V) one-hot blob)
    story = story_ref[...]                                             # (B, S) int32
    viota = jax.lax.broadcasted_iota(jnp.int32, (1, 1, V), 2)          # hoisted
    p_ctx = jnp.zeros((B, TT, V), f32)
    for s in range(S):   # static unroll; use lax.fori_loop for very large S
        hit = (story[:, s:s + 1][:, None, :] == viota).astype(f32)     # (B, 1, V)
        p_ctx = p_ctx + probs[:, :, s:s + 1] * hit

    p_gen3 = p_gen.reshape(B, TT, 1)
    pfinal_ref[...] = p_gen3 * p_vocab.reshape(B, TT, V) + (1.0 - p_gen3) * p_ctx


def trade_decoder_pallas(x_all, h0, enc, story, valid, hh_pre,
                         wih_p, bih_p, e_t, wr_p, b_r, *, tile_t=8):
    """x_all: (B, T, D) batch-major decoder inputs. Returns (p_final (B,T,V), ctx_step0 (B,D))."""
    B, T, D = x_all.shape
    S = enc.shape[1]
    V = e_t.shape[1]
    TT = tile_t
    T_pad = ((T + TT - 1) // TT) * TT
    if T_pad != T:
        x_all = jnp.pad(x_all, ((0, 0), (0, T_pad - T), (0, 0)))
    n_tiles = T_pad // TT

    in_specs = [
        pl.BlockSpec((B, TT, D), lambda i: (0, i, 0)),        # x tile (TT steps)
        pl.BlockSpec((B, D), lambda i: (0, 0)),               # encoder hidden h0
        pl.BlockSpec((B, 3 * D), lambda i: (0, 0)),           # hoisted h0@W_hh + b_hh
        pl.BlockSpec((B, S, D), lambda i: (0, 0, 0)),         # encoded outputs
        pl.BlockSpec((B, S), lambda i: (0, 0)),               # validity mask (f32 0/1)
        pl.BlockSpec((B, S), lambda i: (0, 0)),               # story token ids
        pl.BlockSpec((D, 3 * D), lambda i: (0, 0)),           # fused W_ih (r|z|n)
        pl.BlockSpec((1, 3 * D), lambda i: (0, 0)),           # fused b_ih
        pl.BlockSpec((D, V), lambda i: (0, 0)),               # shared embedding^T
        pl.BlockSpec((3 * D, 1), lambda i: (0, 0)),           # fused w_ratio
        pl.BlockSpec(memory_space=pltpu.MemorySpace.SMEM),    # b_ratio scalar
    ]
    out_specs = (
        pl.BlockSpec((B, TT, V), lambda i: (0, i, 0)),        # p_final (lane-dense V)
        pl.BlockSpec((1, B, D), lambda i: (i, 0, 0)),         # first-step context/tile
    )
    out_shape = (jax.ShapeDtypeStruct((B, T_pad, V), jnp.float32),
                 jax.ShapeDtypeStruct((n_tiles, B, D), jnp.float32))

    p_final, ctx0 = pl.pallas_call(
        decoder_tile_kernel,
        grid=(n_tiles,),
        in_specs=in_specs,
        out_specs=out_specs,
        out_shape=out_shape,
        compiler_params=pltpu.CompilerParams(dimension_semantics=("parallel",)),
    )(x_all, h0, hh_pre, enc, valid, story, wih_p, bih_p, e_t, wr_p, b_r)
    return p_final[:, :T, :], ctx0[0]


# ----------------------------------------------------------------------------
# Plain-JAX reference (mirrors the PyTorch math) used as a correctness check.
# ----------------------------------------------------------------------------
def reference_forward(x_all, h0, enc, story, lens,
                      wih3, whh3, bih3, bhh3, e_t, w_gate, b_gate, wr3, b_r):
    S = enc.shape[1]
    V = e_t.shape[1]

    def step(x):                                   # x: (B, D), one decoding step
        r = jax.nn.sigmoid(x @ wih3[0] + bih3[0] + h0 @ whh3[0] + bhh3[0])
        z = jax.nn.sigmoid(x @ wih3[1] + bih3[1] + h0 @ whh3[1] + bhh3[1])
        n = jnp.tanh(x @ wih3[2] + bih3[2] + r * (h0 @ whh3[2] + bhh3[2]))
        h = (1.0 - z) * n + z * h0
        scores = jnp.einsum('bsd,bd->bs', enc, h)
        pos = jnp.arange(S, dtype=jnp.int32)[None, :]
        scores_m = jnp.where(pos < lens, scores, -jnp.inf)
        probs = jax.nn.softmax(scores_m, axis=1)
        ctx_w = jnp.where(pos < lens, scores, 0.0)         # raw masked scores
        context = jnp.einsum('bs,bsd->bd', ctx_w, enc)
        gate = context @ w_gate + b_gate
        p_vocab = jax.nn.softmax(h @ e_t, axis=1)
        p_gen = jax.nn.sigmoid(h @ wr3[0] + context @ wr3[1] + x @ wr3[2] + b_r)
        onehot = jax.nn.one_hot(story, V, dtype=jnp.float32)
        p_ctx = jnp.einsum('bs,bsv->bv', probs, onehot)
        return p_gen * p_vocab + (1.0 - p_gen) * p_ctx, gate

    pf, gates = jax.vmap(step, in_axes=1, out_axes=(1, 0))(x_all)   # (B,T,V), (T,B,G)
    return pf, gates[0]


# ----------------------------------------------------------------------------
# StateGenerator.forward glue (parameter packing, embedding lookups, outputs)
# ----------------------------------------------------------------------------
def state_generator_forward(params, batch_size, encoded_hidden, encoded_outputs,
                            encoded_lens, story, max_resp_len, trg_batches,
                            b_use_teacher_forcing, slots, slot_words_to_ids):
    (E, pairs_emb, wih3, whh3, bih3, bhh3, wr3, b_r, w_gate, b_gate) = params
    B = batch_size
    T = max_resp_len
    V, D = E.shape
    G = b_gate.shape[1]
    S = encoded_outputs.shape[1]
    n_slots = len(slots)

    # The original forward returns inside the slot loop: only slot 0 is decoded.
    slot0 = slots[0]
    dom_id = slot_words_to_ids[slot0.split('-')[0]]
    slt_id = slot_words_to_ids[slot0.split('-')[1]]
    slot_emb = pairs_emb[dom_id] + pairs_emb[slt_id]                  # (D,)

    # Teacher forcing: all decoder inputs are known ahead of time (batch-major).
    assert b_use_teacher_forcing   # TODO(synk): greedy-feedback decode not implemented
    x0 = jnp.broadcast_to(slot_emb[None, None, :], (B, 1, D))         # dropout==identity
    x_rest = E[trg_batches[:, 0, :T - 1]]                             # (B, T-1, D)
    x_all = jnp.concatenate([x0, x_rest], axis=1)                     # (B, T, D)

    # Pack GRU weights (r|z|n) and hoist the constant hidden-side projection.
    wih_p = jnp.concatenate([wih3[0], wih3[1], wih3[2]], axis=1)      # (D, 3D)
    bih_p = jnp.concatenate([bih3[0], bih3[1], bih3[2]], axis=1)      # (1, 3D)
    hh_pre = jnp.concatenate(
        [encoded_hidden @ whh3[k] + bhh3[k] for k in range(3)], axis=1)   # (B, 3D)
    wr_p = jnp.concatenate([wr3[0], wr3[1], wr3[2]], axis=0)          # (3D, 1)

    # Length mask (1 = valid, 0 = padded), computed once on the host side.
    valid = (jnp.arange(S, dtype=jnp.int32)[None, :] < encoded_lens).astype(jnp.float32)

    e_t = E.T                                                         # (D, V)
    p_final, ctx0 = trade_decoder_pallas(
        x_all, encoded_hidden, encoded_outputs, story, valid, hh_pre,
        wih_p, bih_p, e_t, wr_p, b_r)

    # Slot gate (only needed at global step 0) computed outside the kernel.
    gate0 = ctx0 @ w_gate + b_gate                                    # (B, G)

    ptr_outputs = jnp.zeros((n_slots, B, T, V), jnp.float32).at[0].set(p_final)
    gate_outputs = jnp.zeros((n_slots, B, G), jnp.float32).at[0].set(gate0)

    pred = jnp.argmax(p_final, axis=-1)                               # (B, T)
    # vocab.ids_to_words lookup is a host-side dict; use synthetic word names.
    words = [f"<w{int(pred[b, t])}>" for t in range(T) for b in range(B)]
    words_point_out = [words]
    return ptr_outputs, gate_outputs, words_point_out, [], (x_all, e_t, p_final, gate0)


if __name__ == "__main__":
    B, D, S, V, T, G = 4, 32, 8, 128, 16, 3
    slots = ["hotel-area", "hotel-pricerange", "train-day"]
    n_slots = len(slots)

    slot_words_to_ids = {}
    for slot in slots:
        for w in slot.split('-'):
            if w not in slot_words_to_ids:
                slot_words_to_ids[w] = len(slot_words_to_ids)

    key = jax.random.PRNGKey(0)
    ks = jax.random.split(key, 16)

    # Deterministic synthetic parameters (shapes from the module __init__).
    E = jax.random.normal(ks[0], (V, D), jnp.float32) * 0.1           # shared_embedding
    pairs_emb = jax.random.normal(ks[1], (len(slot_words_to_ids), D), jnp.float32) * 0.1
    kstd = 1.0 / float(np.sqrt(D))
    wih3 = jax.random.uniform(ks[2], (3, D, D), jnp.float32, -kstd, kstd)   # GRU W_ih^T (r,z,n)
    whh3 = jax.random.uniform(ks[3], (3, D, D), jnp.float32, -kstd, kstd)   # GRU W_hh^T
    bih3 = jax.random.uniform(ks[4], (3, 1, D), jnp.float32, -kstd, kstd)
    bhh3 = jax.random.uniform(ks[5], (3, 1, D), jnp.float32, -kstd, kstd)
    krat = 1.0 / float(np.sqrt(3 * D))
    wr3 = jax.random.uniform(ks[6], (3, D, 1), jnp.float32, -krat, krat)    # w_ratio split
    b_r = jax.random.uniform(ks[7], (1, 1), jnp.float32, -krat, krat)
    w_gate = jax.random.uniform(ks[8], (D, G), jnp.float32, -kstd, kstd)
    b_gate = jax.random.uniform(ks[9], (1, G), jnp.float32, -kstd, kstd)
    params = (E, pairs_emb, wih3, whh3, bih3, bhh3, wr3, b_r, w_gate, b_gate)

    # Deterministic synthetic inputs.
    encoded_hidden = jax.random.normal(ks[10], (B, D), jnp.float32)
    encoded_outputs = jax.random.normal(ks[11], (B, S, D), jnp.float32)
    encoded_lens = jnp.full((B, 1), S, jnp.int32)   # full lengths
    story = jax.random.randint(ks[12], (B, S), 0, V, jnp.int32)
    trg_batches = jax.random.randint(ks[13], (B, n_slots, T), 0, V, jnp.int32)

    ptr_outputs, gate_outputs, words_point_out, _, dbg = state_generator_forward(
        params, B, encoded_hidden, encoded_outputs, encoded_lens, story,
        T, trg_batches, True, slots, slot_words_to_ids)
    jax.block_until_ready((ptr_outputs, gate_outputs))

    # Check the Pallas kernel against the plain-JAX reference.
    x_all, e_t, p_final, gate0 = dbg
    pf_ref, gate_ref = reference_forward(
        x_all, encoded_hidden, encoded_outputs, story, encoded_lens,
        wih3, whh3, bih3, bhh3, e_t, w_gate, b_gate, wr3, b_r)
    assert np.allclose(np.asarray(p_final), np.asarray(pf_ref), rtol=3e-2, atol=2e-3)
    assert np.allclose(np.asarray(gate0), np.asarray(gate_ref), rtol=3e-2, atol=2e-3)
    assert ptr_outputs.shape == (n_slots, B, T, V)
    assert gate_outputs.shape == (n_slots, B, G)
    assert len(words_point_out[0]) == T * B

    print("KERNEL_OK")
</pallas_src>

<mosaic_0001>
module attributes {stable_mosaic.version = 11 : i64} {
  func.func @decoder_tile_kernel(%arg0: i32, %arg1: memref<4x8x32xf32, #tpu.memory_space<vmem>>, %arg2: memref<4x32xf32, #tpu.memory_space<vmem>>, %arg3: memref<4x96xf32, #tpu.memory_space<vmem>>, %arg4: memref<4x8x32xf32, #tpu.memory_space<vmem>>, %arg5: memref<4x8xf32, #tpu.memory_space<vmem>>, %arg6: memref<4x8xi32, #tpu.memory_space<vmem>>, %arg7: memref<32x96xf32, #tpu.memory_space<vmem>>, %arg8: memref<1x96xf32, #tpu.memory_space<vmem>>, %arg9: memref<32x128xf32, #tpu.memory_space<vmem>>, %arg10: memref<96x1xf32, #tpu.memory_space<vmem>>, %arg11: memref<1x1xf32, #tpu.memory_space<smem>>, %arg12: memref<4x8x128xf32, #tpu.memory_space<vmem>>, %arg13: memref<1x4x32xf32, #tpu.memory_space<vmem>>) attributes {dimension_semantics = [#tpu.dimension_semantics<parallel>], iteration_bounds = array<i64: 2>, scalar_prefetch = 0 : i64, scratch_operands = 0 : i64, tpu.core_type = #tpu.core_type<tc>, window_params = [{transform_indices = @transform_0, window_bounds = array<i64: 4, 8, 32>}, {pipeline_mode = #tpu.pipeline_mode<synchronous>, transform_indices = @transform_1, window_bounds = array<i64: 4, 32>}, {pipeline_mode = #tpu.pipeline_mode<synchronous>, transform_indices = @transform_2, window_bounds = array<i64: 4, 96>}, {pipeline_mode = #tpu.pipeline_mode<synchronous>, transform_indices = @transform_3, window_bounds = array<i64: 4, 8, 32>}, {pipeline_mode = #tpu.pipeline_mode<synchronous>, transform_indices = @transform_4, window_bounds = array<i64: 4, 8>}, {pipeline_mode = #tpu.pipeline_mode<synchronous>, transform_indices = @transform_5, window_bounds = array<i64: 4, 8>}, {pipeline_mode = #tpu.pipeline_mode<synchronous>, transform_indices = @transform_6, window_bounds = array<i64: 32, 96>}, {pipeline_mode = #tpu.pipeline_mode<synchronous>, transform_indices = @transform_7, window_bounds = array<i64: 1, 96>}, {pipeline_mode = #tpu.pipeline_mode<synchronous>, transform_indices = @transform_8, window_bounds = array<i64: 32, 128>}, {pipeline_mode = #tpu.pipeline_mode<synchronous>, transform_indices = @transform_9, window_bounds = array<i64: 96, 1>}, {transform_indices = @transform_10, window_bounds = array<i64: 1, 1>}, {transform_indices = @transform_11, window_bounds = array<i64: 4, 8, 128>}, {transform_indices = @transform_12, window_bounds = array<i64: 1, 4, 32>}]} {
    %c0 = arith.constant 0 : index
    %c0_0 = arith.constant 0 : index
    %c0_1 = arith.constant 0 : index
    %0 = vector.load %arg1[%c0, %c0_0, %c0_1] : memref<4x8x32xf32, #tpu.memory_space<vmem>>, vector<4x8x32xf32>
    %1 = vector.shape_cast %0 : vector<4x8x32xf32> to vector<32x32xf32>
    %c0_2 = arith.constant 0 : index
    %c0_3 = arith.constant 0 : index
    %2 = vector.load %arg2[%c0_2, %c0_3] : memref<4x32xf32, #tpu.memory_space<vmem>>, vector<4x32xf32>
    %3 = vector.shape_cast %2 : vector<4x32xf32> to vector<4x1x32xf32>
    %4 = vector.shape_cast %3 : vector<4x1x32xf32> to vector<4x1x32xf32>
    %5 = vector.broadcast %4 : vector<4x1x32xf32> to vector<4x8x32xf32>
    %6 = vector.shape_cast %5 : vector<4x8x32xf32> to vector<32x32xf32>
    %c0_4 = arith.constant 0 : index
    %c0_5 = arith.constant 0 : index
    %7 = vector.load %arg3[%c0_4, %c0_5] : memref<4x96xf32, #tpu.memory_space<vmem>>, vector<4x96xf32>
    %8 = vector.shape_cast %7 : vector<4x96xf32> to vector<4x1x96xf32>
    %9 = vector.shape_cast %8 : vector<4x1x96xf32> to vector<4x1x96xf32>
    %10 = vector.broadcast %9 : vector<4x1x96xf32> to vector<4x8x96xf32>
    %11 = vector.shape_cast %10 : vector<4x8x96xf32> to vector<32x96xf32>
    %c0_6 = arith.constant 0 : index
    %c0_7 = arith.constant 0 : index
    %12 = vector.load %arg7[%c0_6, %c0_7] : memref<32x96xf32, #tpu.memory_space<vmem>>, vector<32x96xf32>
    %cst = arith.constant dense<0.000000e+00> : vector<32x96xf32>
    %13 = tpu.matmul %1, %12, %cst {dimension_numbers = #tpu.dot_dimension_numbers<[1], [0], [0], [1], [0, 0, 1, 1], [], []>} : vector<32x32xf32>, vector<32x96xf32>, vector<32x96xf32> -> vector<32x96xf32>
    %c0_8 = arith.constant 0 : index
    %c0_9 = arith.constant 0 : index
    %14 = vector.load %arg8[%c0_8, %c0_9] : memref<1x96xf32, #tpu.memory_space<vmem>>, vector<1x96xf32>
    %15 = vector.broadcast %14 : vector<1x96xf32> to vector<32x96xf32>
    %16 = arith.addf %13, %15 : vector<32x96xf32>
    %17 = vector.extract_strided_slice %16 {offsets = [0, 0], sizes = [32, 32], strides = [1, 1]} : vector<32x96xf32> to vector<32x32xf32>
    %18 = vector.extract_strided_slice %11 {offsets = [0, 0], sizes = [32, 32], strides = [1, 1]} : vector<32x96xf32> to vector<32x32xf32>
    %19 = arith.addf %17, %18 : vector<32x32xf32>
    %20 = arith.negf %19 : vector<32x32xf32>
    %21 = math.exp %20 : vector<32x32xf32>
    %cst_10 = arith.constant 1.000000e+00 : f32
    %22 = vector.broadcast %cst_10 : f32 to vector<32x32xf32>
    %23 = arith.addf %22, %21 : vector<32x32xf32>
    %24 = arith.divf %22, %23 : vector<32x32xf32>
    %25 = vector.extract_strided_slice %16 {offsets = [0, 32], sizes = [32, 32], strides = [1, 1]} : vector<32x96xf32> to vector<32x32xf32>
    %26 = vector.extract_strided_slice %11 {offsets = [0, 32], sizes = [32, 32], strides = [1, 1]} : vector<32x96xf32> to vector<32x32xf32>
    %27 = arith.addf %25, %26 : vector<32x32xf32>
    %28 = arith.negf %27 : vector<32x32xf32>
    %29 = math.exp %28 : vector<32x32xf32>
    %cst_11 = arith.constant 1.000000e+00 : f32
    %30 = vector.broadcast %cst_11 : f32 to vector<32x32xf32>
    %31 = arith.addf %30, %29 : vector<32x32xf32>
    %32 = arith.divf %30, %31 : vector<32x32xf32>
    %33 = vector.extract_strided_slice %16 {offsets = [0, 64], sizes = [32, 32], strides = [1, 1]} : vector<32x96xf32> to vector<32x32xf32>
    %34 = vector.extract_strided_slice %11 {offsets = [0, 64], sizes = [32, 32], strides = [1, 1]} : vector<32x96xf32> to vector<32x32xf32>
    %35 = arith.mulf %24, %34 : vector<32x32xf32>
    %36 = arith.addf %33, %35 : vector<32x32xf32>
    %37 = math.tanh %36 : vector<32x32xf32>
    %cst_12 = arith.constant 1.000000e+00 : f32
    %38 = vector.broadcast %cst_12 : f32 to vector<32x32xf32>
    %39 = arith.subf %38, %32 : vector<32x32xf32>
    %40 = arith.mulf %39, %37 : vector<32x32xf32>
    %41 = arith.mulf %32, %6 : vector<32x32xf32>
    %42 = arith.addf %40, %41 : vector<32x32xf32>
    %c0_13 = arith.constant 0 : index
    %c0_14 = arith.constant 0 : index
    %c0_15 = arith.constant 0 : index
    %43 = vector.load %arg4[%c0_13, %c0_14, %c0_15] : memref<4x8x32xf32, #tpu.memory_space<vmem>>, vector<4x8x32xf32>
    %44 = vector.shape_cast %42 : vector<32x32xf32> to vector<4x8x32xf32>
    "tpu.trace_start"() <{level = 10 : i32, message = "btd,bsd->bts"}> : () -> ()
    %cst_16 = arith.constant dense<0.000000e+00> : vector<4x8x8xf32>
    %45 = tpu.matmul %44, %43, %cst_16 {dimension_numbers = #tpu.dot_dimension_numbers<[2], [2], [1], [1], [0, 0, 0, 1, 1, 1], [0], [0]>} : vector<4x8x32xf32>, vector<4x8x32xf32>, vector<4x8x8xf32> -> vector<4x8x8xf32>
    "tpu.trace_stop"() : () -> ()
    %c0_17 = arith.constant 0 : index
    %c0_18 = arith.constant 0 : index
    %46 = vector.load %arg5[%c0_17, %c0_18] : memref<4x8xf32, #tpu.memory_space<vmem>>, vector<4x8xf32>
    %47 = vector.shape_cast %46 : vector<4x8xf32> to vector<4x1x8xf32>
    %cst_19 = arith.constant 1.000000e+00 : f32
    %48 = vector.broadcast %cst_19 : f32 to vector<4x1x8xf32>
    %49 = arith.subf %47, %48 : vector<4x1x8xf32>
    %cst_20 = arith.constant 1.000000e+30 : f32
    %50 = vector.broadcast %cst_20 : f32 to vector<4x1x8xf32>
    %51 = arith.mulf %49, %50 : vector<4x1x8xf32>
    %52 = vector.broadcast %51 : vector<4x1x8xf32> to vector<4x8x8xf32>
    %53 = arith.addf %45, %52 : vector<4x8x8xf32>
    %cst_21 = arith.constant dense<0xFF800000> : vector<4x8xf32>
    %54 = vector.multi_reduction <maximumf>, %53, %cst_21 [2] : vector<4x8x8xf32> to vector<4x8xf32>
    %55 = vector.shape_cast %54 : vector<4x8xf32> to vector<4x8x1xf32>
    %56 = vector.broadcast %55 : vector<4x8x1xf32> to vector<4x8x8xf32>
    %57 = arith.subf %53, %56 : vector<4x8x8xf32>
    %58 = math.exp %57 : vector<4x8x8xf32>
    %cst_22 = arith.constant dense<0.000000e+00> : vector<4x8xf32>
    %59 = vector.multi_reduction <add>, %58, %cst_22 [2] : vector<4x8x8xf32> to vector<4x8xf32>
    %60 = vector.shape_cast %59 : vector<4x8xf32> to vector<4x8x1xf32>
    %61 = tpu.reciprocal %60 {approx = true} : vector<4x8x1xf32> -> vector<4x8x1xf32>
    %62 = vector.broadcast %61 : vector<4x8x1xf32> to vector<4x8x8xf32>
    %63 = arith.mulf %58, %62 : vector<4x8x8xf32>
    %64 = vector.broadcast %47 : vector<4x1x8xf32> to vector<4x8x8xf32>
    %65 = arith.mulf %45, %64 : vector<4x8x8xf32>
    "tpu.trace_start"() <{level = 10 : i32, message = "bts,bsd->btd"}> : () -> ()
    %cst_23 = arith.constant dense<0.000000e+00> : vector<4x8x32xf32>
    %66 = tpu.matmul %65, %43, %cst_23 {dimension_numbers = #tpu.dot_dimension_numbers<[2], [1], [1], [2], [0, 0, 0, 1, 1, 2], [0], [0]>} : vector<4x8x8xf32>, vector<4x8x32xf32>, vector<4x8x32xf32> -> vector<4x8x32xf32>
    "tpu.trace_stop"() : () -> ()
    %67 = vector.extract_strided_slice %66 {offsets = [0, 0, 0], sizes = [4, 1, 32], strides = [1, 1, 1]} : vector<4x8x32xf32> to vector<4x1x32xf32>
    %68 = vector.shape_cast %67 : vector<4x1x32xf32> to vector<4x32xf32>
    %c0_24 = arith.constant 0 : index
    %c0_25 = arith.constant 0 : index
    %c0_26 = arith.constant 0 : index
    %69 = vector.load %arg13[%c0_24, %c0_25, %c0_26] : memref<1x4x32xf32, #tpu.memory_space<vmem>>, vector<1x4x32xf32>
    %70 = vector.shape_cast %69 : vector<1x4x32xf32> to vector<4x32xf32>
    %71 = vector.shape_cast %68 : vector<4x32xf32> to vector<1x4x32xf32>
    tpu.vector_store %arg13[%c0_24, %c0_25, %c0_26], %71 {strides = array<i32>} : memref<1x4x32xf32, #tpu.memory_space<vmem>>, vector<1x4x32xf32>,
    %c0_27 = arith.constant 0 : index
    %c0_28 = arith.constant 0 : index
    %72 = vector.load %arg9[%c0_27, %c0_28] : memref<32x128xf32, #tpu.memory_space<vmem>>, vector<32x128xf32>
    %cst_29 = arith.constant dense<0.000000e+00> : vector<32x128xf32>
    %73 = tpu.matmul %42, %72, %cst_29 {dimension_numbers = #tpu.dot_dimension_numbers<[1], [0], [0], [1], [0, 0, 1, 1], [], []>} : vector<32x32xf32>, vector<32x128xf32>, vector<32x128xf32> -> vector<32x128xf32>
    %cst_30 = arith.constant dense<0xFF800000> : vector<32xf32>
    %74 = vector.multi_reduction <maximumf>, %73, %cst_30 [1] : vector<32x128xf32> to vector<32xf32>
    %75 = vector.shape_cast %74 : vector<32xf32> to vector<32x1xf32>
    %76 = vector.broadcast %75 : vector<32x1xf32> to vector<32x128xf32>
    %77 = arith.subf %73, %76 : vector<32x128xf32>
    %78 = math.exp %77 : vector<32x128xf32>
    %cst_31 = arith.constant dense<0.000000e+00> : vector<32xf32>
    %79 = vector.multi_reduction <add>, %78, %cst_31 [1] : vector<32x128xf32> to vector<32xf32>
    %80 = vector.shape_cast %79 : vector<32xf32> to vector<32x1xf32>
    %81 = tpu.reciprocal %80 {approx = true} : vector<32x1xf32> -> vector<32x1xf32>
    %82 = vector.broadcast %81 : vector<32x1xf32> to vector<32x128xf32>
    %83 = arith.mulf %78, %82 : vector<32x128xf32>
    %84 = vector.shape_cast %66 : vector<4x8x32xf32> to vector<32x32xf32>
    %85 = tpu.concatenate %42, %84, %1 in 1 : vector<32x32xf32>, vector<32x32xf32>, vector<32x32xf32> -> vector<32x96xf32>
    %c0_32 = arith.constant 0 : index
    %c0_33 = arith.constant 0 : index
    %86 = vector.load %arg10[%c0_32, %c0_33] : memref<96x1xf32, #tpu.memory_space<vmem>>, vector<96x1xf32>
    %cst_34 = arith.constant dense<0.000000e+00> : vector<32x1xf32>
    %87 = tpu.matmul %85, %86, %cst_34 {dimension_numbers = #tpu.dot_dimension_numbers<[1], [0], [0], [1], [0, 0, 1, 1], [], []>} : vector<32x96xf32>, vector<96x1xf32>, vector<32x1xf32> -> vector<32x1xf32>
    %c0_35 = arith.constant 0 : index
    %c0_36 = arith.constant 0 : index
    %88 = memref.load %arg11[%c0_35, %c0_36] : memref<1x1xf32, #tpu.memory_space<smem>>
    %89 = vector.broadcast %88 : f32 to vector<32x1xf32>
    %90 = arith.addf %87, %89 : vector<32x1xf32>
    %91 = arith.negf %90 : vector<32x1xf32>
    %92 = math.exp %91 : vector<32x1xf32>
    %cst_37 = arith.constant 1.000000e+00 : f32
    %93 = vector.broadcast %cst_37 : f32 to vector<32x1xf32>
    %94 = arith.addf %93, %92 : vector<32x1xf32>
    %95 = arith.divf %93, %94 : vector<32x1xf32>
    %c0_38 = arith.constant 0 : index
    %c0_39 = arith.constant 0 : index
    %96 = vector.load %arg6[%c0_38, %c0_39] : memref<4x8xi32, #tpu.memory_space<vmem>>, vector<4x8xi32>
    %97 = tpu.iota {dimensions = array<i32: 2>} : vector<1x1x128xi32>
    %cst_40 = arith.constant 0.000000e+00 : f32
    %98 = vector.broadcast %cst_40 : f32 to vector<4x8x128xf32>
    %99 = vector.extract_strided_slice %96 {offsets = [0, 0], sizes = [4, 1], strides = [1, 1]} : vector<4x8xi32> to vector<4x1xi32>
    %100 = vector.shape_cast %99 : vector<4x1xi32> to vector<4x1x1xi32>
    %101 = vector.broadcast %100 : vector<4x1x1xi32> to vector<4x1x128xi32>
    %102 = vector.broadcast %97 : vector<1x1x128xi32> to vector<4x1x128xi32>
    %103 = arith.cmpi eq, %101, %102 : vector<4x1x128xi32>
    %104 = arith.extui %103 : vector<4x1x128xi1> to vector<4x1x128xi32>
    %105 = arith.sitofp %104 : vector<4x1x128xi32> to vector<4x1x128xf32>
    %106 = vector.extract_strided_slice %63 {offsets = [0, 0, 0], sizes = [4, 8, 1], strides = [1, 1, 1]} : vector<4x8x8xf32> to vector<4x8x1xf32>
    %107 = vector.broadcast %106 : vector<4x8x1xf32> to vector<4x8x128xf32>
    %108 = vector.broadcast %105 : vector<4x1x128xf32> to vector<4x8x128xf32>
    %109 = arith.mulf %107, %108 : vector<4x8x128xf32>
    %110 = arith.addf %98, %109 : vector<4x8x128xf32>
    %111 = vector.extract_strided_slice %96 {offsets = [0, 1], sizes = [4, 1], strides = [1, 1]} : vector<4x8xi32> to vector<4x1xi32>
    %112 = vector.shape_cast %111 : vector<4x1xi32> to vector<4x1x1xi32>
    %113 = vector.broadcast %112 : vector<4x1x1xi32> to vector<4x1x128xi32>
    %114 = vector.broadcast %97 : vector<1x1x128xi32> to vector<4x1x128xi32>
    %115 = arith.cmpi eq, %113, %114 : vector<4x1x128xi32>
    %116 = arith.extui %115 : vector<4x1x128xi1> to vector<4x1x128xi32>
    %117 = arith.sitofp %116 : vector<4x1x128xi32> to vector<4x1x128xf32>
    %118 = vector.extract_strided_slice %63 {offsets = [0, 0, 1], sizes = [4, 8, 1], strides = [1, 1, 1]} : vector<4x8x8xf32> to vector<4x8x1xf32>
    %119 = vector.broadcast %118 : vector<4x8x1xf32> to vector<4x8x128xf32>
    %120 = vector.broadcast %117 : vector<4x1x128xf32> to vector<4x8x128xf32>
    %121 = arith.mulf %119, %120 : vector<4x8x128xf32>
    %122 = arith.addf %110, %121 : vector<4x8x128xf32>
    %123 = vector.extract_strided_slice %96 {offsets = [0, 2], sizes = [4, 1], strides = [1, 1]} : vector<4x8xi32> to vector<4x1xi32>
    %124 = vector.shape_cast %123 : vector<4x1xi32> to vector<4x1x1xi32>
    %125 = vector.broadcast %124 : vector<4x1x1xi32> to vector<4x1x128xi32>
    %126 = vector.broadcast %97 : vector<1x1x128xi32> to vector<4x1x128xi32>
    %127 = arith.cmpi eq, %125, %126 : vector<4x1x128xi32>
    %128 = arith.extui %127 : vector<4x1x128xi1> to vector<4x1x128xi32>
    %129 = arith.sitofp %128 : vector<4x1x128xi32> to vector<4x1x128xf32>
    %130 = vector.extract_strided_slice %63 {offsets = [0, 0, 2], sizes = [4, 8, 1], strides = [1, 1, 1]} : vector<4x8x8xf32> to vector<4x8x1xf32>
    %131 = vector.broadcast %130 : vector<4x8x1xf32> to vector<4x8x128xf32>
    %132 = vector.broadcast %129 : vector<4x1x128xf32> to vector<4x8x128xf32>
    %133 = arith.mulf %131, %132 : vector<4x8x128xf32>
    %134 = arith.addf %122, %133 : vector<4x8x128xf32>
    %135 = vector.extract_strided_slice %96 {offsets = [0, 3], sizes = [4, 1], strides = [1, 1]} : vector<4x8xi32> to vector<4x1xi32>
    %136 = vector.shape_cast %135 : vector<4x1xi32> to vector<4x1x1xi32>
    %137 = vector.broadcast %136 : vector<4x1x1xi32> to vector<4x1x128xi32>
    %138 = vector.broadcast %97 : vector<1x1x128xi32> to vector<4x1x128xi32>
    %139 = arith.cmpi eq, %137, %138 : vector<4x1x128xi32>
    %140 = arith.extui %139 : vector<4x1x128xi1> to vector<4x1x128xi32>
    %141 = arith.sitofp %140 : vector<4x1x128xi32> to vector<4x1x128xf32>
    %142 = vector.extract_strided_slice %63 {offsets = [0, 0, 3], sizes = [4, 8, 1], strides = [1, 1, 1]} : vector<4x8x8xf32> to vector<4x8x1xf32>
    %143 = vector.broadcast %142 : vector<4x8x1xf32> to vector<4x8x128xf32>
    %144 = vector.broadcast %141 : vector<4x1x128xf32> to vector<4x8x128xf32>
    %145 = arith.mulf %143, %144 : vector<4x8x128xf32>
    %146 = arith.addf %134, %145 : vector<4x8x128xf32>
    %147 = vector.extract_strided_slice %96 {offsets = [0, 4], sizes = [4, 1], strides = [1, 1]} : vector<4x8xi32> to vector<4x1xi32>
    %148 = vector.shape_cast %147 : vector<4x1xi32> to vector<4x1x1xi32>
    %149 = vector.broadcast %148 : vector<4x1x1xi32> to vector<4x1x128xi32>
    %150 = vector.broadcast %97 : vector<1x1x128xi32> to vector<4x1x128xi32>
    %151 = arith.cmpi eq, %149, %150 : vector<4x1x128xi32>
    %152 = arith.extui %151 : vector<4x1x128xi1> to vector<4x1x128xi32>
    %153 = arith.sitofp %152 : vector<4x1x128xi32> to vector<4x1x128xf32>
    %154 = vector.extract_strided_slice %63 {offsets = [0, 0, 4], sizes = [4, 8, 1], strides = [1, 1, 1]} : vector<4x8x8xf32> to vector<4x8x1xf32>
    %155 = vector.broadcast %154 : vector<4x8x1xf32> to vector<4x8x128xf32>
    %156 = vector.broadcast %153 : vector<4x1x128xf32> to vector<4x8x128xf32>
    %157 = arith.mulf %155, %156 : vector<4x8x128xf32>
    %158 = arith.addf %146, %157 : vector<4x8x128xf32>
    %159 = vector.extract_strided_slice %96 {offsets = [0, 5], sizes = [4, 1], strides = [1, 1]} : vector<4x8xi32> to vector<4x1xi32>
    %160 = vector.shape_cast %159 : vector<4x1xi32> to vector<4x1x1xi32>
    %161 = vector.broadcast %160 : vector<4x1x1xi32> to vector<4x1x128xi32>
    %162 = vector.broadcast %97 : vector<1x1x128xi32> to vector<4x1x128xi32>
    %163 = arith.cmpi eq, %161, %162 : vector<4x1x128xi32>
    %164 = arith.extui %163 : vector<4x1x128xi1> to vector<4x1x128xi32>
    %165 = arith.sitofp %164 : vector<4x1x128xi32> to vector<4x1x128xf32>
    %166 = vector.extract_strided_slice %63 {offsets = [0, 0, 5], sizes = [4, 8, 1], strides = [1, 1, 1]} : vector<4x8x8xf32> to vector<4x8x1xf32>
    %167 = vector.broadcast %166 : vector<4x8x1xf32> to vector<4x8x128xf32>
    %168 = vector.broadcast %165 : vector<4x1x128xf32> to vector<4x8x128xf32>
    %169 = arith.mulf %167, %168 : vector<4x8x128xf32>
    %170 = arith.addf %158, %169 : vector<4x8x128xf32>
    %171 = vector.extract_strided_slice %96 {offsets = [0, 6], sizes = [4, 1], strides = [1, 1]} : vector<4x8xi32> to vector<4x1xi32>
    %172 = vector.shape_cast %171 : vector<4x1xi32> to vector<4x1x1xi32>
    %173 = vector.broadcast %172 : vector<4x1x1xi32> to vector<4x1x128xi32>
    %174 = vector.broadcast %97 : vector<1x1x128xi32> to vector<4x1x128xi32>
    %175 = arith.cmpi eq, %173, %174 : vector<4x1x128xi32>
    %176 = arith.extui %175 : vector<4x1x128xi1> to vector<4x1x128xi32>
    %177 = arith.sitofp %176 : vector<4x1x128xi32> to vector<4x1x128xf32>
    %178 = vector.extract_strided_slice %63 {offsets = [0, 0, 6], sizes = [4, 8, 1], strides = [1, 1, 1]} : vector<4x8x8xf32> to vector<4x8x1xf32>
    %179 = vector.broadcast %178 : vector<4x8x1xf32> to vector<4x8x128xf32>
    %180 = vector.broadcast %177 : vector<4x1x128xf32> to vector<4x8x128xf32>
    %181 = arith.mulf %179, %180 : vector<4x8x128xf32>
    %182 = arith.addf %170, %181 : vector<4x8x128xf32>
    %183 = vector.extract_strided_slice %96 {offsets = [0, 7], sizes = [4, 1], strides = [1, 1]} : vector<4x8xi32> to vector<4x1xi32>
    %184 = vector.shape_cast %183 : vector<4x1xi32> to vector<4x1x1xi32>
    %185 = vector.broadcast %184 : vector<4x1x1xi32> to vector<4x1x128xi32>
    %186 = vector.broadcast %97 : vector<1x1x128xi32> to vector<4x1x128xi32>
    %187 = arith.cmpi eq, %185, %186 : vector<4x1x128xi32>
    %188 = arith.extui %187 : vector<4x1x128xi1> to vector<4x1x128xi32>
    %189 = arith.sitofp %188 : vector<4x1x128xi32> to vector<4x1x128xf32>
    %190 = vector.extract_strided_slice %63 {offsets = [0, 0, 7], sizes = [4, 8, 1], strides = [1, 1, 1]} : vector<4x8x8xf32> to vector<4x8x1xf32>
    %191 = vector.broadcast %190 : vector<4x8x1xf32> to vector<4x8x128xf32>
    %192 = vector.broadcast %189 : vector<4x1x128xf32> to vector<4x8x128xf32>
    %193 = arith.mulf %191, %192 : vector<4x8x128xf32>
    %194 = arith.addf %182, %193 : vector<4x8x128xf32>
    %195 = vector.shape_cast %95 : vector<32x1xf32> to vector<4x8x1xf32>
    %196 = vector.shape_cast %83 : vector<32x128xf32> to vector<4x8x128xf32>
    %197 = vector.broadcast %195 : vector<4x8x1xf32> to vector<4x8x128xf32>
    %198 = arith.mulf %197, %196 : vector<4x8x128xf32>
    %cst_41 = arith.constant 1.000000e+00 : f32
    %199 = vector.broadcast %cst_41 : f32 to vector<4x8x1xf32>
    %200 = arith.subf %199, %195 : vector<4x8x1xf32>
    %201 = vector.broadcast %200 : vector<4x8x1xf32> to vector<4x8x128xf32>
    %202 = arith.mulf %201, %194 : vector<4x8x128xf32>
    %203 = arith.addf %198, %202 : vector<4x8x128xf32>
    %c0_42 = arith.constant 0 : index
    %c0_43 = arith.constant 0 : index
    %c0_44 = arith.constant 0 : index
    %204 = vector.load %arg12[%c0_42, %c0_43, %c0_44] : memref<4x8x128xf32, #tpu.memory_space<vmem>>, vector<4x8x128xf32>
    tpu.vector_store %arg12[%c0_42, %c0_43, %c0_44], %203 {strides = array<i32>} : memref<4x8x128xf32, #tpu.memory_space<vmem>>, vector<4x8x128xf32>,
    return
  }
  func.func @transform_0(%arg0: i32) -> (i32, i32, i32) {
    %c0_i32 = arith.constant 0 : i32
    %c0_i32_0 = arith.constant 0 : i32
    %c0_i32_1 = arith.constant 0 : i32
    return %c0_i32, %arg0, %c0_i32_0 : i32, i32, i32
  }
  func.func @transform_1(%arg0: i32) -> (i32, i32) {
    %c0_i32 = arith.constant 0 : i32
    %c0_i32_0 = arith.constant 0 : i32
    %c0_i32_1 = arith.constant 0 : i32
    return %c0_i32, %c0_i32_0 : i32, i32
  }
  func.func @transform_2(%arg0: i32) -> (i32, i32) {
    %c0_i32 = arith.constant 0 : i32
    %c0_i32_0 = arith.constant 0 : i32
    %c0_i32_1 = arith.constant 0 : i32
    return %c0_i32, %c0_i32_0 : i32, i32
  }
  func.func @transform_3(%arg0: i32) -> (i32, i32, i32) {
    %c0_i32 = arith.constant 0 : i32
    %c0_i32_0 = arith.constant 0 : i32
    %c0_i32_1 = arith.constant 0 : i32
    %c0_i32_2 = arith.constant 0 : i32
    return %c0_i32, %c0_i32_0, %c0_i32_1 : i32, i32, i32
  }
  func.func @transform_4(%arg0: i32) -> (i32, i32) {
    %c0_i32 = arith.constant 0 : i32
    %c0_i32_0 = arith.constant 0 : i32
    %c0_i32_1 = arith.constant 0 : i32
    return %c0_i32, %c0_i32_0 : i32, i32
  }
  func.func @transform_5(%arg0: i32) -> (i32, i32) {
    %c0_i32 = arith.constant 0 : i32
    %c0_i32_0 = arith.constant 0 : i32
    %c0_i32_1 = arith.constant 0 : i32
    return %c0_i32, %c0_i32_0 : i32, i32
  }
  func.func @transform_6(%arg0: i32) -> (i32, i32) {
    %c0_i32 = arith.constant 0 : i32
    %c0_i32_0 = arith.constant 0 : i32
    %c0_i32_1 = arith.constant 0 : i32
    return %c0_i32, %c0_i32_0 : i32, i32
  }
  func.func @transform_7(%arg0: i32) -> (i32, i32) {
    %c0_i32 = arith.constant 0 : i32
    %c0_i32_0 = arith.constant 0 : i32
    %c0_i32_1 = arith.constant 0 : i32
    return %c0_i32, %c0_i32_0 : i32, i32
  }
  func.func @transform_8(%arg0: i32) -> (i32, i32) {
    %c0_i32 = arith.constant 0 : i32
    %c0_i32_0 = arith.constant 0 : i32
    %c0_i32_1 = arith.constant 0 : i32
    return %c0_i32, %c0_i32_0 : i32, i32
  }
  func.func @transform_9(%arg0: i32) -> (i32, i32) {
    %c0_i32 = arith.constant 0 : i32
    %c0_i32_0 = arith.constant 0 : i32
    %c0_i32_1 = arith.constant 0 : i32
    return %c0_i32, %c0_i32_0 : i32, i32
  }
  func.func @transform_10(%arg0: i32) -> (i32, i32) {
    %c0_i32 = arith.constant 0 : i32
    %c0_i32_0 = arith.constant 0 : i32
    %c0_i32_1 = arith.constant 0 : i32
    return %c0_i32, %c0_i32_0 : i32, i32
  }
  func.func @transform_11(%arg0: i32) -> (i32, i32, i32) {
    %c0_i32 = arith.constant 0 : i32
    %c0_i32_0 = arith.constant 0 : i32
    %c0_i32_1 = arith.constant 0 : i32
    return %c0_i32, %arg0, %c0_i32_0 : i32, i32, i32
  }
  func.func @transform_12(%arg0: i32) -> (i32, i32, i32) {
    %c0_i32 = arith.constant 0 : i32
    %c0_i32_0 = arith.constant 0 : i32
    %c0_i32_1 = arith.constant 0 : i32
    return %arg0, %c0_i32, %c0_i32_0 : i32, i32, i32
  }
}

</mosaic_0001>

<bundles_post_ra>
// kernel: tpu_custom_call.1
= control target key start
LH: loop header
LB: loop body
LE: loop exit
PB: predicated region body
PF: predicated region fallthrough
CT: control target
= control target key end

     0   :  { %s4606_s0 = inlined_call_operand.vmem [shape: f32[4,16,32], index: 0, kind: input, shape index: {}]   ;;  %s4607_s1 = inlined_call_operand.hbm [shape: f32[4,32], index: 1, kind: input, shape index: {}]   ;;  %s4608_s2 = inlined_call_operand.hbm [shape: f32[4,96], index: 2, kind: input, shape index: {}]   ;;  %s4609_s3 = inlined_call_operand.vmem [shape: f32[4,8,32], index: 3, kind: input, shape index: {}]   ;;  %s4610_s4 = inlined_call_operand.hbm [shape: f32[4,8], index: 4, kind: input, shape index: {}]   ;;  %s4611_s5 = inlined_call_operand.hbm [shape: s32[4,8], index: 5, kind: input, shape index: {}]   ;;  %s4612_s6 = inlined_call_operand.hbm [shape: f32[32,96], index: 6, kind: input, shape index: {}]   ;;  %s4613_s7 = inlined_call_operand.vmem [shape: f32[1,96], index: 7, kind: input, shape index: {}]   ;;  %s4614_s8 = inlined_call_operand.vmem [shape: f32[32,128], index: 8, kind: input, shape index: {}]   ;;  %s4615_s9 = inlined_call_operand.vmem [shape: f32[96,1], index: 9, kind: input, shape index: {}]   ;;  %s4616_s10 = inlined_call_operand.<no memory space> [shape: f32[1,1], index: 10, kind: input, shape index: {}]   ;;  %s4617_s11 = inlined_call_operand.hbm [shape: f32[4,16,128], index: 11, kind: output, shape index: {0}]   ;;  %s4618_s12 = inlined_call_operand.hbm [shape: f32[2,4,32], index: 12, kind: output, shape index: {1}]  }
   0x1   :  { %4628 = sst [smem:[#allocation25_spill]] %s4608_s2 }
   0x2   :  { %4629 = sst [smem:[#allocation26_spill]] %s4617_s11 }
   0x3   :  { %4630 = sst [smem:[#allocation27_spill]] %s4618_s12 }
   0x4   :  { %18 = sst [smem:[#allocation2]] %s4616_s10 }
   0x5   :  { %19 = vsyncpa [#allocation5], 0 }
   0x6   :  { %20 = vsyncpa [#allocation8], 0 }
   0x7   :  { %21 = vsyncpa [#allocation11], 0 }
   0x8   :  { %22 = vsyncpa [#allocation6], 0 }
   0x9   :  { %24 = vsyncpa [#allocation6 + $0x1], 0 }
   0xa   :  { %25 = vsyncpa [#allocation15], 0 }
   0xb   :  { %27 = vsyncpa [#allocation15 + $0x1], 0  ;;  %s3550_s23 = smov 0   ;;  %s3552_s24 = smov 0  }
   0xc   :  { %s3554_s25 = smov 0   ;;  %s3556_s26 = smov 0  }
   0xd LB: > { %4631 = sst [smem:[#allocation21_spill]] %s3442_s23  ;;  %s3571_s10 = sadd.s32 4294967295, %s3454_s26   ;;  %s3454_s26 = sphi %s3556_s26, %s4736_s26   ;;  %s3450_s25 = sphi %s3554_s25, %s4740_s25   ;;  %s3446_s24 = sphi %s3552_s24, %s4739_s24   ;;  %s3442_s23 = sphi %s3550_s23, %s4738_s23  }
   0xe   : > { %s2689_s27 = sadd.s32 4294967294, %s3454_s26   ;;  %s3575_s28 = sadd.s32 1, %s3454_s26  }
   0xf   : > { %4632 = sst [smem:[#allocation22_spill]] %s3575_s28  ;;  %s40_s29 = sadd.s32 1, %s3450_s25 }
  0x10   : > { %s37_s30 = ssub.s32 %s3454_s26, %s3575_s28  ;;  %p47_p0 = scmp.ne.s32.totalorder %s3450_s25, %s3446_s24 }
  0x11   : > { %p38_p1 = scmp.eq.s32.totalorder %s37_s30, 0  ;;  %p48_p2 = scmp.eq.s32.totalorder %s3454_s26, 0 }
  0x12   : > { %p287_p3 = scmp.eq.s32.totalorder %s3571_s10, 1  ;;  %p292_p4 = scmp.ne.s32.totalorder %s3446_s24, %s3442_s23 }
  0x13   : > { %s3587_s13 = scalar_select %p38_p1, %s3450_s25, %s40_s29  }
  0x14   : > { %p3589_p5 = por %p48_p2, %p47_p0  ;;  %p3593_p6 = por %p287_p3, %p47_p0 }
  0x15   : > { %4633 = sst [smem:[#allocation23_spill]] %s3587_s13  ;;  %p293_p7 = scmp.eq.s32.totalorder %s2689_s27, 1 }
  0x16   : > { %s4634_s14 = scalar_select %p3589_p5, 1, 0 }
  0x17   : > { %s4635_s15 = scalar_select %p3593_p6, 1, 0 }
  0x18   : > { %p2690_p8 = scmp.ge.s32.totalorder %s3454_s26, 1  ;;  %p326_p9 = scmp.lt.s32.totalorder %s3454_s26, 3 }
  0x19   : > { %p3599_p10 = por %p293_p7, %p292_p4  ;;  %p4623_p11 = scmp.eq.s32.totalorder %s3571_s10, 0 }
  0x1a   : > { %p3604_p12 = pnand %p2690_p8, %p326_p9  ;;  %s3456_s18 = smov [#allocation7]  }
  0x1b   : > { %s4636_s16 = scalar_select %p3599_p10, 1, 0 }
  0x1c   : > { %s4638_s17 = scalar_select %p3604_p12, 1, 0 }
  0x1d   : > { %4637 = sst [smem:[#allocation24_spill]] %s4636_s16  ;;  %s350_s19 = sshll.u32 %s3456_s18, 4  ;;  %s351_s19 = int_to_ptr.vmem [resolvable:$true] %s350_s19 }
  0x1e   : > { %p2997_p13 = pneg %p3604_p12  ;;  %s3457_s20 = smov [#allocation10]  }
  0x1f   : > { %s375_s21 = sshll.u32 %s3457_s20, 4  ;;  %s3458_s27 = smov [#allocation4]   ;;  %s3616_s21 = int_to_ptr.vmem [resolvable:$true] %s375_s21 }
  0x20   : > { %p3612_p0 = pnand %p4623_p11, %p2997_p13  ;;  %s339_s29 = sshll.u32 %s3458_s27, 4  ;;  %s3618_s29 = int_to_ptr.vmem [resolvable:$true] %s339_s29 }
  0x21   : > { %s4640_s2 = sld [smem:[#allocation25_spill]] }
  0x22   : > { %p3628_p2 = pneg %p3612_p0 }
  0x27   : > { %s3208_s18 = scalar_lea.hbm %s4640_s2, 64 }
  0x28   : > { %p3209_p1 = scmp.ne.s32.totalorder %s4640_s2, %s3208_s18  ;;  %p3215_p7 = scmp.lt.u32.totalorder %s3208_s18, %s4640_s2 }
  0x2a   : > { %p3211_p3 = pnand %p3628_p2, %p3209_p1 }
  0x2c   : > { %p3212_p4 = pneg %p3211_p3 }
  0x2e   : > { %p3217_p8 = pnand %p3215_p7, %p3212_p4 }
  0x30   : > { %3220 = shalt.err (!%p3217_p8)
}
  0x31   : > { %s3221_s13 = scalar_lea.vmem %s351_s19, 64  ;;  %p3229_p10 = scmp.lt.s32.totalorder %s351_s19, %s351_s19 }
  0x32   : > { %p3222_p9 = scmp.ne.s32.totalorder %s351_s19, %s3221_s13  ;;  %p3230_p6 = scmp.lt.s32.totalorder %s3221_s13, %s3221_s13 }
  0x34   : > { %p3224_p13 = pnand %p3222_p9, %p3628_p2  ;;  %p3231_p12 = por %p3230_p6, %p3229_p10 }
  0x36   : > { %p3225_p11 = pneg %p3224_p13 }
  0x38   : > { %p3232_p5 = pnand %p3231_p12, %p3225_p11 }
  0x3a   : > { %3235 = shalt.err (!%p3232_p5)
}
  0x3b   : > { %3003 = dma.hbm_to_vmem [thread:$0]  (!%p3612_p0), %s4640_s2, 64, %s351_s19, [#allocation8]  }
  0x3c   : > { %s3236_s18 = scalar_lea.hbm %s4611_s5, 64 }
  0x3d   : > { %p3237_p1 = scmp.ne.s32.totalorder %s4611_s5, %s3236_s18  ;;  %p3243_p5 = scmp.lt.u32.totalorder %s3236_s18, %s4611_s5 }
  0x3f   : > { %p3239_p3 = pnand %p3237_p1, %p3628_p2 }
  0x41   : > { %p3240_p6 = pneg %p3239_p3 }
  0x43   : > { %p3245_p10 = pnand %p3243_p5, %p3240_p6 }
  0x45   : > { %3248 = shalt.err (!%p3245_p10)
}
  0x46   : > { %s3249_s19 = scalar_lea.vmem %s3616_s21, 64  ;;  %p3257_p7 = scmp.lt.s32.totalorder %s3616_s21, %s3616_s21 }
  0x47   : > { %p3250_p11 = scmp.ne.s32.totalorder %s3616_s21, %s3249_s19  ;;  %p3258_p8 = scmp.lt.s32.totalorder %s3249_s19, %s3249_s19 }
  0x49   : > { %p3252_p12 = pnand %p3250_p11, %p3628_p2  ;;  %p3259_p9 = por %p3258_p8, %p3257_p7 }
  0x4b   : > { %p3253_p4 = pneg %p3252_p12 }
  0x4d   : > { %p3260_p13 = pnand %p3259_p9, %p3253_p4 }
  0x4f   : > { %3263 = shalt.err (!%p3260_p13)
}
  0x50   : > { %3009 = dma.hbm_to_vmem [thread:$0]  (!%p3612_p0), %s4611_s5, 64, %s3616_s21, [#allocation11]  }
  0x51   : > { %s3264_s23 = scalar_lea.hbm %s4607_s1, 64 }
  0x52   : > { %p3265_p1 = scmp.ne.s32.totalorder %s4607_s1, %s3264_s23  ;;  %p3271_p5 = scmp.lt.u32.totalorder %s3264_s23, %s4607_s1 }
  0x54   : > { %p3267_p3 = pnand %p3265_p1, %p3628_p2 }
  0x56   : > { %p3268_p6 = pneg %p3267_p3 }
  0x58   : > { %p3273_p10 = pnand %p3271_p5, %p3268_p6 }
  0x5a   : > { %3276 = shalt.err (!%p3273_p10)
}
  0x5b   : > { %s3277_s21 = scalar_lea.vmem %s3618_s29, 64  ;;  %p3285_p7 = scmp.lt.s32.totalorder %s3618_s29, %s3618_s29 }
  0x5c   : > { %p3278_p11 = scmp.ne.s32.totalorder %s3618_s29, %s3277_s21  ;;  %p3286_p8 = scmp.lt.s32.totalorder %s3277_s21, %s3277_s21 }
  0x5e   : > { %p3280_p12 = pnand %p3278_p11, %p3628_p2  ;;  %p3287_p9 = por %p3286_p8, %p3285_p7 }
  0x60   : > { %p3281_p4 = pneg %p3280_p12 }
  0x62   : > { %p3288_p13 = pnand %p3287_p9, %p3281_p4 }
  0x64   : > { %3291 = shalt.err (!%p3288_p13)
}
  0x65   : > { %3000 = dma.hbm_to_vmem [thread:$0]  (!%p3612_p0), %s4607_s1, 64, %s3618_s29, [#allocation5]  }
  0x66   : > { %s3459_s12 = smov [#allocation9]   ;;  %s3460_s16 = smov [#allocation12]  }
  0x67   : > { %s364_s28 = sshll.u32 %s3459_s12, 4  ;;  %s385_s23 = sshll.u32 %s3460_s16, 4  ;;  %s365_s28 = int_to_ptr.vmem [resolvable:$true] %s364_s28  ;;  %s386_s23 = int_to_ptr.vmem [resolvable:$true] %s385_s23 }
  0x68   : > { %s3292_s27 = scalar_lea.hbm %s4610_s4, 64 }
  0x69   : > { %p3293_p1 = scmp.ne.s32.totalorder %s4610_s4, %s3292_s27  ;;  %p3299_p5 = scmp.lt.u32.totalorder %s3292_s27, %s4610_s4 }
  0x6b   : > { %p3295_p3 = pnand %p3293_p1, %p3628_p2 }
  0x6d   : > { %p3296_p6 = pneg %p3295_p3 }
  0x6f   : > { %p3301_p10 = pnand %p3299_p5, %p3296_p6 }
  0x71   : > { %3304 = shalt.err (!%p3301_p10)
}
  0x72   : > { %s3305_s29 = scalar_lea.vmem %s365_s28, 64  ;;  %p3313_p7 = scmp.lt.s32.totalorder %s365_s28, %s365_s28 }
  0x73   : > { %p3306_p11 = scmp.ne.s32.totalorder %s365_s28, %s3305_s29  ;;  %p3314_p8 = scmp.lt.s32.totalorder %s3305_s29, %s3305_s29 }
  0x75   : > { %p3308_p12 = pnand %p3306_p11, %p3628_p2  ;;  %p3315_p9 = por %p3314_p8, %p3313_p7 }
  0x77   : > { %p3309_p4 = pneg %p3308_p12 }
  0x79   : > { %p3316_p13 = pnand %p3315_p9, %p3309_p4 }
  0x7b   : > { %3319 = shalt.err (!%p3316_p13)
}
  0x7c   : > { %3006 = dma.hbm_to_vmem [thread:$0]  (!%p3612_p0), %s4610_s4, 64, %s365_s28, [#allocation8]  }
  0x7d   : > { %s3320_s30 = scalar_lea.hbm %s4612_s6, 512 }
  0x7e   : > { %p3321_p1 = scmp.ne.s32.totalorder %s4612_s6, %s3320_s30  ;;  %p3327_p5 = scmp.lt.u32.totalorder %s3320_s30, %s4612_s6 }
  0x80   : > { %p3323_p3 = pnand %p3321_p1, %p3628_p2 }
  0x82   : > { %p3324_p6 = pneg %p3323_p3 }
  0x84   : > { %p3329_p10 = pnand %p3327_p5, %p3324_p6 }
  0x86   : > { %3332 = shalt.err (!%p3329_p10)
}
  0x87   : > { %s3333_s19 = scalar_lea.vmem %s386_s23, 512  ;;  %p3341_p7 = scmp.lt.s32.totalorder %s386_s23, %s386_s23 }
  0x88   : > { %p3334_p11 = scmp.ne.s32.totalorder %s386_s23, %s3333_s19  ;;  %p3342_p8 = scmp.lt.s32.totalorder %s3333_s19, %s3333_s19 }
  0x8a   : > { %p3336_p12 = pnand %p3334_p11, %p3628_p2  ;;  %p3343_p9 = por %p3342_p8, %p3341_p7 }
  0x8c   : > { %p3337_p4 = pneg %p3336_p12 }
  0x8e   : > { %p3344_p13 = pnand %p3343_p9, %p3337_p4 }
  0x90   : > { %3347 = shalt.err (!%p3344_p13)
}
  0x91   : > { %s3461_s28 = smov 128   ;;  %s3462_s29 = smov 8  }
  0x92   : > { %3012 = dma.hbm_to_vmem [thread:$0]  (!%p3612_p0), %s4612_s6, 512, %s386_s23, [#allocation11], %s3461_s28, %s3461_s28, %s3462_s29  }
  0x93   : > { %p2696_p1 = scmp.ge.s32.totalorder %s3454_s26, 2 }
  0x94   : > { %p4642_p2 = scmp.ne.s32.totalorder (!%p2696_p1), %s4634_s14, 0 }
  0x95   : > { %407 = sbr.rel (%p2696_p1) target bundleno = 163 (0xa3), region = 56 }
  0x9c   : > { %410 = sbr.rel (!%p4642_p2) target bundleno = 163 (0xa3), region = 60  ;;  %s412_s20 = sand.u32 (%p4642_p2), 1, %s3450_s25  }
  0x9d   : > { %s2698_s2 = sshll.u32 (%p4642_p2), %s3454_s26, 3  ;;  %s2697_s16 = sshll.u32 (%p4642_p2), %s412_s20, 5 }
  0x9e   : > { %s416_s22 = scalar_lea.vmem (%p4642_p2), %s4606_s0, %s2698_s2  ;;  %s414_s23 = scalar_lea.vmem (%p4642_p2), [#allocation3], %s2697_s16 }
  0x9f   : > { %v450_v0 = vld [vmem:[%s416_s22] sm:$0xff] (%p4642_p2)  ;;  %v452_v1 = vld [vmem:[%s416_s22 + $0x10] sm:$0xff] (%p4642_p2) }
  0xa0   : > { %v454_v2 = vld [vmem:[%s416_s22 + $0x20] sm:$0xff] (%p4642_p2)  ;;  %451 = vst [vmem:[%s414_s23] sm:$0xff] (%p4642_p2), %v450_v0  ;;  %453 = vst [vmem:[%s414_s23 + $0x8] sm:$0xff] (%p4642_p2), %v452_v1  ;;  %v456_v3 = vld [vmem:[%s416_s22 + $0x30] sm:$0xff] (%p4642_p2) }
  0xa1   : > { %455 = vst [vmem:[%s414_s23 + $0x10] sm:$0xff] (%p4642_p2), %v454_v2  ;;  %457 = vst [vmem:[%s414_s23 + $0x18] sm:$0xff] (%p4642_p2), %v456_v3 }
  0xa3 PF: > { %p4643_p0 = scmp.ne.s32.totalorder %s4638_s17, 0 }
  0xa4   : > { %s3739_s14 = sand.u32 (!%p4643_p0), 1, %s3446_s24   ;;  %p4644_p3 = scmp.eq.s32.totalorder (!%p4643_p0), %s3571_s10, 0 }
  0xa5   : > { %466 = sbr.rel (%p4643_p0) target bundleno = 1754 (0x6da), region = 98  ;;  %s2700_s27 = sshll.u32 (!%p4643_p0), %s3739_s14, 5 }
  0xa6   : > { %s3744_s13 = scalar_lea.vmem (!%p4643_p0), [#allocation3], %s2700_s27 }
  0xac   : > { %3421 = dma.done.wait (%p4644_p3), [#allocation5], 64   ;;  %p4645_p6 = pmov %p4644_p3 }
  0xad   : > { %p4646_p5 = pmov %p4644_p3 }
  0xae   : > { %3423 = vsyncadd (%p4645_p6), [#allocation5], 4294967232 }
  0xaf   : > { %3425 = dma.done.wait (%p4646_p5), [#allocation8], 128   ;;  %p4647_p10 = pmov %p4644_p3 }
  0xb0   : > { %p4648_p11 = pmov %p4644_p3 }
  0xb1   : > { %3427 = vsyncadd (%p4647_p10), [#allocation8], 4294967168 }
  0xb2   : > { %3429 = dma.done.wait (%p4648_p11), [#allocation11], 576   ;;  %p4649_p12 = pmov %p4644_p3 }
  0xb3   : > { %v552_v4 = vlaneseq  ;;  %v3463_v5 = vmov 1966171168   ;;  %vm638_vm0 = vcmask 261120   ;;  %v627_v10 = vld [vmem:[#allocation12] sm:$0xff]  ;;  %v628_v11 = vld [vmem:[#allocation12 + $0x8] sm:$0xff]  ;;  %v629_v12 = vld [vmem:[#allocation12 + $0x10] sm:$0xff] }
  0xb4   : > { %3431 = vsyncadd (%p4649_p12), [#allocation11], 4294966720  ;;  %v550_v6 = vunpack.c.l.s4 %v3463_v5  ;;  %v2933_v13 = vpack.c.bf16 %v628_v11, %v627_v10  ;;  %v630_v14 = vld [vmem:[#allocation12 + $0x18] sm:$0xff]  ;;  %v3762_v15 = vld [vmem:[%s3744_s13] sm:$0xff]  ;;  %s3464_s17 = smov 64   ;;  %s3465_s28 = smov 32  }
  0xb5   : > { %v553_v7 = vshrl.u32 %v552_v4, 7  ;;  %v2937_v17 = vpack.c.bf16 %v630_v14, %v629_v12  ;;  %2843 = vmatprep.mubr.msk.f32.mxu1 %vm638_vm0, %v3762_v15  ;;  %v2709_v18 = vld.sshfl [vmem:[#allocation7] sm:$0x33 pattern:$0x75316420]  ;;  %v3775_v27 = vld [vmem:[%s3744_s13 + $0x8] sm:$0xff] }
  0xb6   : > { %v551_v8 = vunpack.c.0.s8 %v550_v6  ;;  %2934 = vmatprep.subr.bf16.mxu1 %v2933_v13  ;;  %v590_v20 = vcombine.high %v2709_v18, %v2709_v18  ;;  %v3778_v28 = vld [vmem:[%s3744_s13 + $0x10] sm:$0xff]  ;;  %v3788_v30 = vld [vmem:[%s3744_s13 + $0x18] sm:$0xff]  ;;  %v2710_v31 = vld [vmem:[%s4613_s7] ss:$0 sm:$0xff]  ;;  %s3466_s29 = smov 96   ;;  %vm3468_vm1 = vmmov 0  }
  0xb7   : > { %v3764_v16 = vsub.s32 0, %v553_v7  ;;  %2936 = vmatpush3.bf16.msra.mxu1 %v2933_v13  ;;  %v2708_v60 = vld.sshfl [vmem:[#allocation4] sm:$0x33 pattern:$0x75316420]  ;;  %vm1230_vm2 = vcmask 64512  }
  0xb8   : > { %v3759_v9 = vsub.s32 %v551_v8, %v553_v7  ;;  %2938 = vmatprep.subr.bf16.mxu1 %v2937_v17  ;;  %v548_v2 = vcombine.high %v2708_v60, %v2708_v60  ;;  %vm1596_vm3 = vcmask 1041409   ;;  %vm1599_vm4 = vcmask 1042434   ;;  %s2707_s19 = sshll.u32 %s3739_s14, 2  ;;  %s2784_s11 = sshll.u32 %s3571_s10, 6 }
  0xb9   : > { %vm1602_vm5 = vcmask 1043459   ;;  %vm1605_vm6 = vcmask 257024   ;;  %vm1764_vm7 = vcmask 523264   ;;  %vm1783_vm8 = vcmask 785408   ;;  %s4721_s2 = sld [smem:[#allocation27_spill]]  ;;  %s2514_s18 = scalar_lea.sflag [#allocation15], %s3739_s14 }
  0xba   : > { %v597_v19 = vrot.slane %v2709_v18, %v3759_v9  ;;  %v604_v23 = vrot.slane %v590_v20, %v3759_v9  ;;  %v555_v1 = vrot.slane %v2708_v60, %v3759_v9  ;;  %v562_v10 = vrot.slane %v548_v2, %v3759_v9  ;;  %v849_v60 = vld [vmem:[%s4609_s3 + $0x8] sm:$0xff]  ;;  %p4723_p7 = scmp.ne.s32.totalorder %s4635_s15, 0  ;;  %s3477_s23 = smov [#allocation14]  }
  0xbb   : > { %2940 = vmatpush3.bf16.msra.mxu1 %v2937_v17  ;;  %s3352_s13 = sshll.u32 %s3477_s23, 4  ;;  %s3353_s13 = int_to_ptr.vmem [resolvable:$false] %s3352_s13 }
  0xbc   : > { %v610_v21 = vrot.slane %v597_v19, %v3764_v16  ;;  %v605_v22 = vcombine.high %v597_v19, %v597_v19  ;;  %v614_v25 = vrot.slane %v604_v23, %v3764_v16  ;;  %v606_v26 = vcombine.high %v604_v23, %v604_v23 }
  0xbd   : > { %v568_v8 = vrot.slane %v555_v1, %v3764_v16  ;;  %v572_v11 = vrot.slane %v562_v10, %v3764_v16  ;;  %v563_v12 = vcombine.high %v555_v1, %v555_v1  ;;  %v564_v14 = vcombine.high %v562_v10, %v562_v10 }
  0xbe   : > { %764 = vrot.lane.b32.xlu0 %v610_v21, %s3464_s17  ;;  %v618_v24 = vrot.slane %v605_v22, %v3764_v16  ;;  %v622_v29 = vrot.slane %v606_v26, %v3764_v16  ;;  %2844 = vmatmul.mubr.msk.f32.vlgmr.msra.gmra.mrb[0].mxu1 %vm638_vm0, %v3775_v27 }
  0xbf   : > { %2846 = vmatprep.mubr.msk.f32.mxu1 %vm638_vm0, %v3778_v28  ;;  %v576_v13 = vrot.slane %v563_v12, %v3764_v16  ;;  %v580_v17 = vrot.slane %v564_v14, %v3764_v16  ;;  %v1608_v12 = vld [vmem:[%s4614_s8 + $0x8] sm:$0xff]  ;;  %s4488_s16 = scalar_lea.hbm %s4721_s2, %s2784_s11 }
  0xc0   : > { %768 = vrot.lane.b32.xlu1 %v618_v24, %s3464_s17 }
  0xc2   : > { %766 = vrot.lane.b32.xlu0 %v614_v25, %s3464_s17  ;;  %2847 = vmatmul.mubr.msk.f32.gmra.mrb[2].mxu1 %vm638_vm0, %v3788_v30 }
  0xc4   : > { %770 = vrot.lane.b32.xlu1 %v622_v29, %s3464_s17 }
 0x130   : > { %v765_v55 = vpop.permute.xlu0 %764 }
 0x132   : > { %v769_v57 = vpop.permute.xlu1 %768 }
 0x134   : > { %v767_v58 = vpop.permute.xlu0 %766 }
 0x136   : > { %v771_v0 = vpop.permute.xlu1 %770 }
 0x191   : > { %v2845_v32 = vpop.f32.mrb[0].mxu1 }
 0x192   : > { %v3796_v33 = vadd.f32 %v2845_v32, %v2710_v31  ;;  %v717_v34 = vpop.f32.mrb[1].mxu1  ;;  %v3467_v32 = vmov 0.0  }
 0x193   : > { %v718_v35 = vadd.f32 %v2710_v31, %v717_v34  ;;  %2849 = vmatprep.subr.mxu1 %v3467_v32  ;;  %2851 = vmatprep.mubr.msk.f32.mxu1 %vm3468_vm1, %v3467_v32 }
 0x194   : > { %v737_v36 = vadd.f32 %v3796_v33, %v614_v25  ;;  %2864 = vmatprep.subr.mxu0 %v3467_v32  ;;  %2866 = vmatprep.mubr.msk.f32.mxu0 %vm3468_vm1, %v3467_v32 }
 0x195   : > { %v736_v37 = vadd.f32 %v718_v35, %v610_v21  ;;  %v2848_v38 = vpop.f32.mrb[2].mxu1 }
 0x196   : > { %v2716_v39 = vmul.f32 -1.442695, %v737_v36  ;;  %v3799_v40 = vadd.f32 %v2848_v38, %v2710_v31  ;;  %v727_v41 = vpop.f32.mrb[3].mxu1 }
 0x197   : > { %v2715_v42 = vmul.f32 -1.442695, %v736_v37  ;;  %v728_v43 = vadd.f32 %v2710_v31, %v727_v41  ;;  %v3834_v31 = vld [vmem:[%s4609_s3] sm:$0xff] }
 0x198   : > { %3136 = vpow2.f32 %v2716_v39  ;;  %v739_v44 = vadd.f32 %v3799_v40, %v622_v29  ;;  %2850 = vmatpush3.xpose.msk.msra.mxu1 %vm638_vm0, %v3834_v31  ;;  %v3852_v39 = vld [vmem:[%s4609_s3 + $0x18] sm:$0xff] }
 0x199   : > { %3138 = vpow2.f32 %v2715_v42  ;;  %v738_v45 = vadd.f32 %v728_v43, %v618_v24  ;;  %2854 = vmatprep.subr.mxu1 %v3467_v32  ;;  %2865 = vmatpush3.xpose.msk.msra.mxu0 %vm638_vm0, %v3852_v39 }
 0x19a   : > { %v2718_v46 = vmul.f32 -1.442695, %v739_v44  ;;  %2874 = vmatprep.subr.mxu0 %v3467_v32 }
 0x19b   : > { %v2717_v47 = vmul.f32 -1.442695, %v738_v45 }
 0x19c   : > { %3140 = vpow2.f32 %v2718_v46 }
 0x19d   : > { %3142 = vpow2.f32 %v2717_v47 }
 0x1a2   : > { %v3137_v48 = vpop.eup %3136 }
 0x1a3   : > { %v3139_v49 = vpop.eup %3138  ;;  %v753_v50 = vadd.f32 1.0, %v3137_v48 }
 0x1a4   : > { %v752_v51 = vadd.f32 1.0, %v3139_v49 }
 0x1a5   : > { %3144 = vrcp.f32 %v753_v50 }
 0x1a6   : > { %v3141_v52 = vpop.eup %3140  ;;  %3146 = vrcp.f32 %v752_v51 }
 0x1a7   : > { %v3143_v53 = vpop.eup %3142  ;;  %v755_v54 = vadd.f32 1.0, %v3141_v52 }
 0x1a8   : > { %v754_v56 = vadd.f32 1.0, %v3143_v53 }
 0x1a9   : > { %3148 = vrcp.f32 %v755_v54 }
 0x1aa   : > { %3150 = vrcp.f32 %v754_v56 }
 0x1af   : > { %v3802_v59 = vpop.eup %3144 }
 0x1b0   : > { %v3804_v61 = vpop.eup %3146  ;;  %v777_v62 = vmul.f32 %v3802_v59, %v767_v58 }
 0x1b1   : > { %v776_v63 = vmul.f32 %v3804_v61, %v765_v55  ;;  %v804_v37 = vsub.f32 1.0, %v3804_v61 }
 0x1b2   : > { %786 = vrot.lane.b32.xlu1 %v777_v62, %s3464_s17  ;;  %v2727_v62 = vld.sshfl [vmem:[#allocation9] sm:$0x33 pattern:$0x75316420] }
 0x1b3   : > { %v3810_v3 = vpop.eup %3148  ;;  %784 = vrot.lane.b32.xlu0 %v776_v63, %s3464_s17  ;;  %v1173_v63 = vcombine.high %v2727_v62, %v2727_v62 }
 0x1b4   : > { %v3813_v5 = vpop.eup %3150  ;;  %v779_v6 = vmul.f32 %v3810_v3, %v771_v0  ;;  %v807_v55 = vsub.f32 1.0, %v3810_v3  ;;  %v1180_v0 = vrot.slane %v2727_v62, %v3759_v9 }
 0x1b5   : > { %v778_v7 = vmul.f32 %v3813_v5, %v769_v57  ;;  %v806_v49 = vsub.f32 1.0, %v3813_v5  ;;  %v1187_v1 = vrot.slane %v1173_v63, %v3759_v9 }
 0x1b6   : > { %790 = vrot.lane.b32.xlu1 %v779_v6, %s3464_s17  ;;  %v2728_v2 = vadd.f32 -1.0, %v1180_v0 }
 0x1b7   : > { %788 = vrot.lane.b32.xlu0 %v778_v7, %s3464_s17  ;;  %v1189_v10 = vcombine.high %v1187_v1, %v1187_v1 }
 0x1ba   : > { %828 = vrot.lane.b32.xlu1 %v568_v8, %s3465_s28  ;;  %v1278_v8 = vrot.slane %v1180_v0, %v3764_v16 }
 0x1be   : > { %830 = vrot.lane.b32.xlu1 %v572_v11, %s3465_s28  ;;  %v1607_v11 = vld [vmem:[%s4614_s8] sm:$0xff] }
 0x1c2   : > { %832 = vrot.lane.b32.xlu1 %v576_v13, %s3465_s28  ;;  %v1188_v13 = vcombine.high %v1180_v0, %v1180_v0 }
 0x1c6   : > { %834 = vrot.lane.b32.xlu1 %v580_v17, %s3465_s28 }
 0x224   : > { %v787_v18 = vpop.permute.xlu1 %786 }
 0x225   : > { %v785_v19 = vpop.permute.xlu0 %784  ;;  %v797_v21 = vadd.f32 %v787_v18, %v3796_v33  ;;  %v1282_v18 = vrot.slane %v1187_v1, %v3764_v16 }
 0x226   : > { %v796_v20 = vadd.f32 %v785_v19, %v718_v35 }
 0x228   : > { %3152 = vtanh.f32 %v796_v20  ;;  %v791_v24 = vpop.permute.xlu1 %790 }
 0x229   : > { %v789_v22 = vpop.permute.xlu0 %788  ;;  %3154 = vtanh.f32 %v797_v21  ;;  %v799_v25 = vadd.f32 %v791_v24, %v3799_v40 }
 0x22a   : > { %v798_v23 = vadd.f32 %v789_v22, %v728_v43  ;;  %v805_v43 = vsub.f32 1.0, %v3802_v59  ;;  %v2941_v22 = vpack.c.bf16 %v1608_v12, %v1607_v11  ;;  %v1772_v11 = vld [vmem:[%s4615_s9 + $0x18] sm:$0xff] }
 0x22c   : > { %3156 = vtanh.f32 %v798_v23  ;;  %v829_v35 = vpop.permute.xlu1 %828  ;;  %v2731_v23 = vadd.f32 -1.0, %v1189_v10 }
 0x22d   : > { %3158 = vtanh.f32 %v799_v25  ;;  %v840_v40 = vmul.f32 %v3804_v61, %v829_v35  ;;  %v2730_v25 = vadd.f32 -1.0, %v1188_v13 }
 0x22e   : > { %v1201_v35 = vmul.f32 1e+30, %v2731_v23 }
 0x230   : > { %v831_v36 = vpop.permute.xlu1 %830 }
 0x231   : > { %v841_v46 = vmul.f32 %v3802_v59, %v831_v36  ;;  %v1609_v36 = vld [vmem:[%s4614_s8 + $0x10] sm:$0xff] }
 0x232   : > { %v3153_v26 = vpop.eup %3152 }
 0x233   : > { %812 = vrot.lane.b32.xlu0 %v3153_v26, %s3466_s29  ;;  %v3155_v29 = vpop.eup %3154 }
 0x234   : > { %v833_v44 = vpop.permute.xlu1 %832 }
 0x235   : > { %v842_v51 = vmul.f32 %v3813_v5, %v833_v44  ;;  %v1198_v5 = vmul.f32 1e+30, %v2728_v2  ;;  %v1221_v44 = vrot.slane %v1201_v35, %v3764_v16 }
 0x236   : > { %v3157_v33 = vpop.eup %3156 }
 0x237   : > { %814 = vrot.lane.b32.xlu0 %v3155_v29, %s3466_s29  ;;  %v3159_v34 = vpop.eup %3158  ;;  %v1209_v7 = vrot.slane %v1198_v5, %v3764_v16 }
 0x238   : > { %v835_v53 = vpop.permute.xlu1 %834 }
 0x239   : > { %v843_v57 = vmul.f32 %v3810_v3, %v835_v53  ;;  %v2729_v3 = vadd.f32 -1.0, %v1187_v1 }
 0x23b   : > { %816 = vrot.lane.b32.xlu0 %v3157_v33, %s3466_s29  ;;  %v1199_v6 = vmul.f32 1e+30, %v2729_v3 }
 0x23d   : > { %v1213_v17 = vrot.slane %v1199_v6, %v3764_v16  ;;  %v1769_v6 = vld [vmem:[%s4615_s9] sm:$0xff] }
 0x23f   : > { %818 = vrot.lane.b32.xlu0 %v3159_v34, %s3466_s29  ;;  %v1286_v34 = vrot.slane %v1188_v13, %v3764_v16  ;;  %v1773_v13 = vld [vmem:[%s4615_s9 + $0x20] sm:$0xff] }
 0x2a5   : > { %v813_v38 = vpop.permute.xlu0 %812 }
 0x2a6   : > { %v824_v41 = vmul.f32 %v813_v38, %v804_v37  ;;  %v1610_v37 = vld [vmem:[%s4614_s8 + $0x18] sm:$0xff] }
 0x2a8   : > { %v844_v42 = vadd.f32 %v840_v40, %v824_v41  ;;  %v1200_v40 = vmul.f32 1e+30, %v2730_v25  ;;  %v1780_v25 = vld [vmem:[%s4615_s9 + $0x58] sm:$0xff] }
 0x2a9   : > { %v815_v45 = vpop.permute.xlu0 %814 }
 0x2aa   : > { %v825_v47 = vmul.f32 %v815_v45, %v805_v43  ;;  %853 = vrot.lane.b32.xlu0 %v844_v42, %s3466_s29  ;;  %v1290_v45 = vrot.slane %v1189_v10, %v3764_v16  ;;  %v1771_v10 = vld [vmem:[%s4615_s9 + $0x10] sm:$0xff] }
 0x2ab   : > { %v2953_v12 = vpack.c.bf16 %v1772_v11, %v1771_v10  ;;  %v3472_v11 = vmov 4  }
 0x2ac   : > { %v845_v48 = vadd.f32 %v841_v46, %v825_v47  ;;  %v2945_v46 = vpack.c.bf16 %v1610_v37, %v1609_v36  ;;  %v1217_v47 = vrot.slane %v1200_v40, %v3764_v16 }
 0x2ad   : > { %v817_v50 = vpop.permute.xlu0 %816 }
 0x2ae   : > { %v826_v52 = vmul.f32 %v817_v50, %v806_v49  ;;  %931 = vrot.lane.b32.xlu1 %v845_v48, %s3466_s29 }
 0x2b0   : > { %v846_v54 = vadd.f32 %v842_v51, %v826_v52 }
 0x2b1   : > { %v819_v56 = vpop.permute.xlu0 %818 }
 0x2b2   : > { %v827_v58 = vmul.f32 %v819_v56, %v807_v55  ;;  %1009 = vrot.lane.b32.xlu0 %v846_v54, %s3466_s29  ;;  %v3469_v55 = vmov 0  }
 0x2b3   : > { %3088 = vset.pattern.permute.xlu0 %v3469_v55  ;;  %3087 = vset.pattern.permute.xlu1 %v3469_v55 }
 0x2b4   : > { %v847_v59 = vadd.f32 %v843_v57, %v827_v58 }
 0x2b6   : > { %1087 = vrot.lane.b32.xlu1 %v847_v59, %s3466_s29  ;;  %1748 = vrot.lane.b32.xlu0 %v3762_v15, %s3464_s17  ;;  %v850_v15 = vld [vmem:[%s4609_s3 + $0x10] sm:$0xff]  ;;  %s4023_s29 = scalar_lea.vmem [#allocation14], %s2707_s19 }
 0x2b7   : > { %s2542_s30 = sshll.u32 %s4023_s29, 4  ;;  %s4491_s30 = int_to_ptr.vmem [resolvable:$true] %s2542_s30 }
 0x2b8   : > { %s3348_s22 = scalar_lea.vmem %s4491_s30, 64  ;;  %p3355_p13 = scmp.lt.s32.totalorder %s4491_s30, %s3353_s13 }
 0x2b9   : > { %p3349_p4 = scmp.ne.s32.totalorder %s4491_s30, %s3348_s22 }
 0x2ba   : > { %1750 = vrot.lane.b32.xlu1 %v3775_v27, %s3464_s17  ;;  %1752 = vrot.lane.b32.xlu0 %v3778_v28, %s3464_s17 }
 0x2bb   : > { %p3350_p8 = pnand %p3349_p4, %p4723_p7 }
 0x2bd   : > { %p3351_p9 = pneg %p3350_p8 }
 0x2be   : > { %1754 = vrot.lane.b32.xlu1 %v3788_v30, %s3464_s17  ;;  %s3354_s17 = scalar_lea.vmem %s3353_s13, 128 }
 0x2bf   : > { %p3356_p2 = scmp.lt.s32.totalorder %s3354_s17, %s3348_s22 }
 0x2c1   : > { %p3357_p0 = por %p3356_p2, %p3355_p13 }
 0x2c3   : > { %p3358_p3 = pnand %p3357_p0, %p3351_p9 }
 0x31c   : > { %v3879_v61 = vpop.permute.xlu0 %853 }
 0x31d   : > { %2852 = vmatmul.mubr.msk.f32.vlgmr.msra.gmra.mrb[4].mxu1 %vm638_vm0, %v3879_v61 }
 0x31e   : > { %2855 = vmatpush3.xpose.msk.msra.mxu1 %vm638_vm0, %v849_v60  ;;  %2856 = vmatprep.mubr.msk.f32.mxu1 %vm3468_vm1, %v3467_v32 }
 0x31f   : > { %2859 = vmatprep.subr.mxu1 %v3467_v32 }
 0x320   : > { %v3890_v27 = vpop.permute.xlu1 %931 }
 0x321   : > { %2857 = vmatmul.mubr.msk.f32.vlgmr.msra.gmra.mrb[6].mxu1 %vm638_vm0, %v3890_v27 }
 0x322   : > { %2860 = vmatpush3.xpose.msk.msra.mxu1 %vm638_vm0, %v850_v15  ;;  %2861 = vmatprep.mubr.msk.f32.mxu1 %vm3468_vm1, %v3467_v32 }
 0x323   : > { %2869 = vmatprep.subr.mxu1 %v3467_v32 }
 0x324   : > { %v3898_v28 = vpop.permute.xlu0 %1009 }
 0x325   : > { %2862 = vmatmul.mubr.msk.f32.vlgmr.msra.gmra.mrb[8].mxu1 %vm638_vm0, %v3898_v28 }
 0x326   : > { %2870 = vmatpush3.msra.mxu1 %v3834_v31  ;;  %2871 = vmatprep.mubr.msk.f32.mxu1 %vm3468_vm1, %v3467_v32 }
 0x327   : > { %2879 = vmatprep.subr.mxu1 %v3467_v32 }
 0x328   : > { %v3906_v30 = vpop.permute.xlu1 %1087  ;;  %v3962_v54 = vpop.permute.xlu0 %1748 }
 0x329   : > { %2867 = vmatmul.mubr.msk.f32.vlgmr.msra.gmra.mrb[0].mxu0 %vm638_vm0, %v3906_v30 }
 0x32a   : > { %2875 = vmatpush3.msra.mxu0 %v849_v60  ;;  %2876 = vmatprep.mubr.msk.f32.mxu0 %vm3468_vm1, %v3467_v32 }
 0x32b   : > { %2884 = vmatprep.subr.mxu0 %v3467_v32 }
 0x32c   : > { %v3966_v56 = vpop.permute.xlu1 %1750  ;;  %v3968_v57 = vpop.permute.xlu0 %1752 }
 0x330   : > { %v3970_v58 = vpop.permute.xlu1 %1754 }
 0x3f0   : > { %v926_v14 = vpop.f32.mrb[4].mxu1 }
 0x3f1   : > { %v1226_v19 = vadd.f32 %v1209_v7, %v926_v14  ;;  %v1295_v20 = vmul.f32 %v1278_v8, %v926_v14  ;;  %v2853_v21 = vpop.f32.mrb[5].mxu1  ;;  %v1770_v7 = vld [vmem:[%s4615_s9 + $0x8] sm:$0xff] }
 0x3f2   : > { %v2949_v8 = vpack.c.bf16 %v1770_v7, %v1769_v6  ;;  %v1774_v14 = vld [vmem:[%s4615_s9 + $0x28] sm:$0xff]  ;;  %v1777_v21 = vld [vmem:[%s4615_s9 + $0x40] sm:$0xff] }
 0x3f3   : > { %2872 = vmatmul.mubr.msk.f32.vlgmr.msra.gmra.mrb[10].mxu1 %vm1230_vm2, %v1295_v20  ;;  %v1231_v24 = vsel %vm1230_vm2, %v1226_v19, -inf }
 0x3f4   : > { %1232 = vmax.xlane.f32.xlu0 %v1231_v24  ;;  %v1004_v26 = vpop.f32.mrb[6].mxu1  ;;  %2880 = vmatpush3.msra.mxu1 %v850_v15  ;;  %v1779_v24 = vld [vmem:[%s4615_s9 + $0x50] sm:$0xff] }
 0x3f5   : > { %v1227_v29 = vadd.f32 %v1213_v17, %v1004_v26  ;;  %v1296_v31 = vmul.f32 %v1282_v18, %v1004_v26  ;;  %v2858_v33 = vpop.f32.mrb[7].mxu1  ;;  %2881 = vmatprep.mubr.msk.f32.mxu1 %vm3468_vm1, %v3467_v32  ;;  %2942 = vmatprep.subr.bf16.mxu1 %v2941_v22  ;;  %v2957_v17 = vpack.c.bf16 %v1774_v14, %v1773_v13  ;;  %v1775_v18 = vld [vmem:[%s4615_s9 + $0x30] sm:$0xff]  ;;  %v3474_v13 = vmov 2  }
 0x3f6   : > { %v2969_v26 = vpack.c.bf16 %v1780_v25, %v1779_v24  ;;  %v3475_v14 = vmov 6  }
 0x3f7   : > { %2877 = vmatmul.mubr.msk.f32.vlgmr.msra.gmra.mrb[2].mxu0 %vm1230_vm2, %v1296_v31  ;;  %v1234_v38 = vsel %vm1230_vm2, %v1227_v29, -inf }
 0x3f8   : > { %1235 = vmax.xlane.f32.xlu1 %v1234_v38  ;;  %v1082_v41 = vpop.f32.mrb[8].mxu1  ;;  %2885 = vmatpush3.msra.mxu0 %v3852_v39 }
 0x3f9   : > { %v1297_v42 = vmul.f32 %v1286_v34, %v1082_v41  ;;  %v2863_v43 = vpop.f32.mrb[9].mxu1  ;;  %2886 = vmatprep.mubr.msk.f32.mxu0 %vm3468_vm1, %v3467_v32  ;;  %v3949_v51 = vadd.f32 %v1217_v47, %v1082_v41  ;;  %2950 = vmatprep.subr.bf16.mxu0 %v2949_v8 }
 0x3fb   : > { %2882 = vmatmul.mubr.msk.f32.vlgmr.msra.gmra.mrb[12].mxu1 %vm1230_vm2, %v1297_v42  ;;  %v1237_v53 = vsel %vm1230_vm2, %v3949_v51, -inf }
 0x3fc   : > { %2944 = vmatpush3.bf16.msra.mxu1 %v2941_v22  ;;  %v1160_v48 = vpop.f32.mrb[0].mxu0  ;;  %2897 = vmatprep.mubr.msk.f32.mxu1 %vm638_vm0, %v3879_v61  ;;  %v1778_v22 = vld [vmem:[%s4615_s9 + $0x48] sm:$0xff] }
 0x3fd   : > { %v3947_v39 = vadd.f32 %v1221_v44, %v1160_v48  ;;  %v1298_v49 = vmul.f32 %v1290_v45, %v1160_v48  ;;  %v2868_v50 = vpop.f32.mrb[1].mxu0  ;;  %2946 = vmatprep.subr.bf16.mxu1 %v2945_v46  ;;  %v2965_v23 = vpack.c.bf16 %v1778_v22, %v1777_v21 }
 0x3ff   : > { %2887 = vmatmul.mubr.msk.f32.vlgmr.msra.gmra.mrb[4].mxu0 %vm1230_vm2, %v1298_v49  ;;  %v1240_v52 = vsel %vm1230_vm2, %v3947_v39, -inf }
 0x400   : > { %2948 = vmatpush3.bf16.msra.mxu1 %v2945_v46  ;;  %1241 = vmax.xlane.f32.xlu0 %v1240_v52 }
 0x401   : > { %2952 = vmatpush3.bf16.msra.mxu0 %v2949_v8  ;;  %v3470_v8 = vmov 1  }
 0x402   : > { %2954 = vmatprep.subr.bf16.mxu0 %v2953_v12 }
 0x403   : > { %2898 = vmatmul.mubr.msk.f32.vlgmr.msra.gmra.mrb[14].mxu1 %vm638_vm0, %v3890_v27 }
 0x404   : > { %2900 = vmatprep.mubr.msk.f32.mxu1 %vm638_vm0, %v3898_v28  ;;  %1238 = vmax.xlane.f32.xlu0 %v1237_v53 }
 0x405   : > { %2956 = vmatpush3.bf16.msra.mxu0 %v2953_v12  ;;  %v3473_v12 = vmov 5  }
 0x406   : > { %2958 = vmatprep.subr.bf16.mxu0 %v2957_v17 }
 0x407   : > { %2901 = vmatmul.mubr.msk.f32.gmra.mrb[16].mxu1 %vm638_vm0, %v3906_v30 }
 0x409   : > { %2960 = vmatpush3.bf16.msra.mxu0 %v2957_v17  ;;  %v3476_v17 = vmov 7  }
 0x481   : > { %v1233_v59 = vpop.xlane.xlu0 %1232 }
 0x482   : > { %v1243_v60 = vsub.f32 %v1226_v19, %v1233_v59  ;;  %v1776_v19 = vld [vmem:[%s4615_s9 + $0x38] sm:$0xff] }
 0x483   : > { %v2961_v20 = vpack.c.bf16 %v1776_v19, %v1775_v18 }
 0x484   : > { %v1247_v15 = vmul.f32 1.442695, %v1243_v60 }
 0x485   : > { %v1236_v62 = vpop.xlane.xlu1 %1235  ;;  %2962 = vmatprep.subr.bf16.mxu0 %v2961_v20 }
 0x486   : > { %3160 = vpow2.f32 %v1247_v15  ;;  %v1244_v63 = vsub.f32 %v1227_v29, %v1236_v62  ;;  %2964 = vmatpush3.bf16.msra.mxu0 %v2961_v20 }
 0x487   : > { %2966 = vmatprep.subr.bf16.mxu0 %v2965_v23 }
 0x488   : > { %v1249_v0 = vmul.f32 1.442695, %v1244_v63 }
 0x48a   : > { %3162 = vpow2.f32 %v1249_v0  ;;  %2968 = vmatpush3.bf16.msra.mxu0 %v2965_v23 }
 0x48b   : > { %2970 = vmatprep.subr.bf16.mxu0 %v2969_v26 }
 0x48d   : > { %v1242_v45 = vpop.xlane.xlu0 %1241 }
 0x48e   : > { %2972 = vmatpush3.bf16.msra.mxu0 %v2969_v26  ;;  %v1246_v49 = vsub.f32 %v3947_v39, %v1242_v45 }
 0x490   : > { %v3972_v1 = vpop.eup %3160  ;;  %v1253_v53 = vmul.f32 1.442695, %v1246_v49  ;;  %v4656_v49 = vmov 0 }
 0x491   : > { %v1255_v2 = vsel %vm1230_vm2, %v3972_v1, 0.0  ;;  %v1239_v59 = vpop.xlane.xlu0 %1238 }
 0x492   : > { %1256 = vadd.xlane.f32.xlu1 %v1255_v2  ;;  %3164 = vpow2.f32 %v1253_v53  ;;  %v1245_v60 = vsub.f32 %v3949_v51, %v1239_v59  ;;  %v2748_v2 = vld.sshfl [vmem:[#allocation10] sm:$0x33 pattern:$0x75316420] }
 0x493   : > { %v4046_v51 = vrot.slane %v2748_v2, %v3759_v9 }
 0x494   : > { %v3976_v3 = vpop.eup %3162  ;;  %v1251_v15 = vmul.f32 1.442695, %v1245_v60 }
 0x495   : > { %v1258_v5 = vsel %vm1230_vm2, %v3976_v3, 0.0  ;;  %v4051_v7 = vcombine.high %v4046_v51, %v4046_v51 }
 0x496   : > { %1259 = vadd.xlane.f32.xlu0 %v1258_v5  ;;  %3166 = vpow2.f32 %v1251_v15  ;;  %v1915_v5 = vcombine.high %v2748_v2, %v2748_v2 }
 0x498   : > { %v4043_v6 = vrot.slane %v1915_v5, %v3759_v9  ;;  %v3471_v9 = vmov 3  }
 0x49a   : > { %v4059_v10 = vcombine.high %v4043_v6, %v4043_v6 }
 0x49c   : > { %v4034_v62 = vpop.eup %3164 }
 0x49d   : > { %v1264_v63 = vsel %vm1230_vm2, %v4034_v62, 0.0 }
 0x4a0   : > { %v4038_v0 = vpop.eup %3166 }
 0x4a1   : > { %v1261_v39 = vsel %vm1230_vm2, %v4038_v0, 0.0 }
 0x4c6   : > { %v1368_v29 = vpop.f32.mrb[10].mxu1 }
 0x4c7   : > { %1736 = vrot.lane.b32.xlu0 %v1368_v29, %s3465_s28  ;;  %v2873_v31 = vpop.f32.mrb[11].mxu1 }
 0x4ca   : > { %v1441_v33 = vpop.f32.mrb[2].mxu0 }
 0x4cb   : > { %v1595_v34 = vrot.slane %v1441_v33, 7  ;;  %v2878_v35 = vpop.f32.mrb[3].mxu0  ;;  %1738 = vrot.lane.b32.xlu1 %v1441_v33, %s3465_s28 }
 0x4cc   : > { %v4650_v35 = vmov 0 }
 0x4cd   : > { %v1597_v36 = vsel %vm1596_vm3, %v1595_v34, %v1368_v29 }
 0x4ce   : > { %v1514_v37 = vpop.f32.mrb[12].mxu1 }
 0x4cf   : > { %v1598_v38 = vrot.slane %v1514_v37, 6  ;;  %1740 = vrot.lane.b32.xlu0 %v1514_v37, %s3465_s28  ;;  %v2883_v40 = vpop.f32.mrb[13].mxu1 }
 0x4d1   : > { %v1600_v41 = vsel %vm1599_vm4, %v1598_v38, %v1597_v36 }
 0x4d2   : > { %v1587_v42 = vpop.f32.mrb[4].mxu0 }
 0x4d3   : > { %v1601_v43 = vrot.slane %v1587_v42, 5  ;;  %v2888_v44 = vpop.f32.mrb[5].mxu0  ;;  %1742 = vrot.lane.b32.xlu1 %v1587_v42, %s3465_s28  ;;  %v4654_v42 = vmov 0  ;;  %s1781_s28 = sld [smem:[#allocation2]] }
 0x4d5   : > { %v1603_v46 = vsel %vm1602_vm5, %v1601_v43, %v1600_v41 }
 0x4d6   : > { %v4021_v47 = vpop.f32.mrb[14].mxu1  ;;  %1606 = vst.msk [vmem:[%s4023_s29] sm:$0xf] %vm1605_vm6, %v1603_v46 }
 0x4d7   : > { %v4026_v48 = vpop.f32.mrb[15].mxu1 }
 0x4da   : > { %v4029_v50 = vpop.f32.mrb[16].mxu1 }
 0x4db   : > { %v4031_v52 = vpop.f32.mrb[17].mxu1 }
 0x4ee   : > { %1265 = vadd.xlane.f32.xlu0 %v1264_v63 }
 0x4f7   : > { %1262 = vadd.xlane.f32.xlu1 %v1261_v39 }
 0x504   : > { %1940 = vperm.xlu0 %3088, %v4043_v6  }
 0x508   : > { %3090 = vset.pattern.permute.xlu0 %v3470_v8  ;;  %1933 = vperm.xlu1 %3087, %v4046_v51  }
 0x509   : > { %2015 = vperm.xlu0 %3090, %v4051_v7  }
 0x50c   : > { %1947 = vperm.xlu1 %3087, %v4051_v7  }
 0x50d   : > { %3092 = vset.pattern.permute.xlu0 %v3471_v9 }
 0x50e   : > { %2129 = vperm.xlu0 %3092, %v4046_v51  }
 0x510   : > { %1954 = vperm.xlu1 %3087, %v4059_v10  }
 0x512   : > { %2150 = vperm.xlu0 %3092, %v4059_v10  }
 0x514   : > { %3089 = vset.pattern.permute.xlu1 %v3470_v8 }
 0x515   : > { %2001 = vperm.xlu1 %3089, %v4046_v51  }
 0x516   : > { %3095 = vset.pattern.permute.xlu0 %v3472_v11 }
 0x517   : > { %2200 = vperm.xlu0 %3095, %v4043_v6  }
 0x519   : > { %2008 = vperm.xlu1 %3089, %v4043_v6  }
 0x51b   : > { %3096 = vset.pattern.permute.xlu0 %v3473_v12 }
 0x51c   : > { %2257 = vperm.xlu0 %3096, %v4046_v51  }
 0x51d   : > { %2022 = vperm.xlu1 %3089, %v4059_v10  }
 0x51f   : > { %v1257_v19 = vpop.xlane.xlu1 %1256 }
 0x520   : > { %2278 = vperm.xlu0 %3096, %v4059_v10   ;;  %3168 = vrcp.f32 %v1257_v19 }
 0x521   : > { %3091 = vset.pattern.permute.xlu1 %v3474_v13 }
 0x522   : > { %2065 = vperm.xlu1 %3091, %v4046_v51  }
 0x523   : > { %v4088_v18 = vpop.xlane.xlu0 %1259 }
 0x524   : > { %3099 = vset.pattern.permute.xlu0 %v3475_v14 }
 0x525   : > { %2328 = vperm.xlu0 %3099, %v4043_v6  }
 0x526   : > { %2079 = vperm.xlu1 %3091, %v4051_v7  }
 0x529   : > { %3100 = vset.pattern.permute.xlu0 %v3476_v17 }
 0x52a   : > { %2385 = vperm.xlu0 %3100, %v4046_v51   ;;  %2086 = vperm.xlu1 %3091, %v4059_v10  }
 0x52e   : > { %2406 = vperm.xlu0 %3100, %v4059_v10   ;;  %3093 = vset.pattern.permute.xlu1 %v3471_v9 }
 0x52f   : > { %2136 = vperm.xlu1 %3093, %v4043_v6  }
 0x532   : > { %3102 = vset.pattern.permute.xlu0 %v3474_v13 }
 0x533   : > { %2072 = vperm.xlu0 %3102, %v4043_v6   ;;  %2143 = vperm.xlu1 %3093, %v4051_v7  }
 0x537   : > { %3094 = vset.pattern.permute.xlu1 %v3472_v11 }
 0x538   : > { %2193 = vperm.xlu1 %3094, %v4046_v51  }
 0x539   : > { %v1737_v20 = vpop.permute.xlu0 %1736 }
 0x53a   : > { %v1760_v21 = vsel %vm638_vm0, %v3879_v61, %v1737_v20  ;;  %v4666_v20 = vmov 0 }
 0x53b   : > { %v1765_v22 = vsel %vm1764_vm7, %v1760_v21, %v3962_v54 }
 0x53c   : > { %2207 = vperm.xlu1 %3094, %v4051_v7   ;;  %2927 = vmatprep.mubr.msk.f32.mxu0 %vm1783_vm8, %v1765_v22 }
 0x53d   : > { %v1739_v23 = vpop.permute.xlu1 %1738 }
 0x53e   : > { %v1761_v24 = vsel %vm638_vm0, %v3890_v27, %v1739_v23  ;;  %v4668_v23 = vmov 0 }
 0x53f   : > { %v1766_v25 = vsel %vm1764_vm7, %v1761_v24, %v3966_v56 }
 0x540   : > { %2214 = vperm.xlu1 %3094, %v4059_v10   ;;  %2928 = vmatmul.mubr.msk.f32.vlgmr.msra.gmra.mrb[6].mxu0 %vm1783_vm8, %v1766_v25 }
 0x541   : > { %v1741_v26 = vpop.permute.xlu0 %1740 }
 0x542   : > { %v1762_v61 = vsel %vm638_vm0, %v3898_v28, %v1741_v26  ;;  %v3169_v28 = vpop.eup %3168 }
 0x543   : > { %v1767_v54 = vsel %vm1764_vm7, %v1762_v61, %v3968_v57 }
 0x544   : > { %3097 = vset.pattern.permute.xlu1 %v3473_v12  ;;  %2930 = vmatprep.mubr.msk.f32.mxu0 %vm1783_vm8, %v1767_v54 }
 0x545   : > { %v1743_v29 = vpop.permute.xlu1 %1742  ;;  %2264 = vperm.xlu1 %3097, %v4043_v6  }
 0x546   : > { %v1763_v27 = vsel %vm638_vm0, %v3906_v30, %v1743_v29  ;;  %v4128_v30 = vmul.f32 %v3169_v28, %v3972_v1  ;;  %v4138_v1 = vand.u32 127, %v552_v4  ;;  %v4674_v28 = vmov 0 }
 0x547   : > { %v1768_v56 = vsel %vm1764_vm7, %v1763_v27, %v3970_v58 }
 0x548   : > { %2931 = vmatmul.mubr.msk.f32.gmra.mrb[8].mxu0 %vm1783_vm8, %v1768_v56 }
 0x549   : > { %2271 = vperm.xlu1 %3097, %v4051_v7  }
 0x54d   : > { %3098 = vset.pattern.permute.xlu1 %v3475_v14 }
 0x54e   : > { %2321 = vperm.xlu1 %3098, %v4046_v51  }
 0x552   : > { %1698 = vmax.xlane.f32.xlu0 %v4021_v47  ;;  %2335 = vperm.xlu1 %3098, %v4051_v7  }
 0x556   : > { %1702 = vmax.xlane.f32.xlu0 %v4029_v50  ;;  %2342 = vperm.xlu1 %3098, %v4059_v10  }
 0x55a   : > { %3101 = vset.pattern.permute.xlu1 %v3476_v17 }
 0x55b   : > { %2392 = vperm.xlu1 %3101, %v4043_v6  }
 0x55f   : > { %2399 = vperm.xlu1 %3101, %v4051_v7  }
 0x563   : > { %3103 = vset.pattern.permute.xlu1 %v3469_v55 }
 0x56c   : > { %2105 = vperm.xlu0 %3102, %v4128_v30  }
 0x570   : > { %3106 = vset.pattern.permute.xlu0 %v3472_v11 }
 0x571   : > { %2233 = vperm.xlu0 %3106, %v4128_v30  }
 0x575   : > { %3109 = vset.pattern.permute.xlu0 %v3476_v17 }
 0x576   : > { %2425 = vperm.xlu0 %3109, %v4128_v30  }
 0x57a   : > { %3111 = vset.pattern.permute.xlu0 %v3470_v8 }
 0x57b   : > { %v1266_v57 = vpop.xlane.xlu0 %1265 }
 0x57c   : > { %3170 = vrcp.f32 %v1266_v57 }
 0x57d   : > { %3172 = vrcp.f32 %v4088_v18 }
 0x583   : > { %1696 = vmax.xlane.f32.xlu1 %v4026_v48  ;;  %v1941_v58 = vpop.permute.xlu0 %1940 }
 0x584   : > { %v1263_v31 = vpop.xlane.xlu1 %1262  ;;  %v1945_v33 = vrot.slane %v1941_v58, %v3764_v16 }
 0x585   : > { %3174 = vrcp.f32 %v1263_v31 }
 0x586   : > { %v3171_v34 = vpop.eup %3170  ;;  %vm4142_vm9 = vcmp.eq.s32.totalorder %v1945_v33, %v4138_v1 }
 0x587   : > { %v4651_v35 = vsel %vm4142_vm9, 4294967295, %v4650_v35  ;;  %v4147_v36 = vmul.f32 %v3171_v34, %v4034_v62  ;;  %1700 = vmax.xlane.f32.xlu1 %v4031_v52  ;;  %v3173_v10 = vpop.eup %3172 }
 0x588   : > { %v1934_v37 = vpop.permute.xlu1 %1933  ;;  %v2016_v38 = vpop.permute.xlu0 %2015  ;;  %v4209_v21 = vmul.f32 %v3173_v10, %v3976_v3 }
 0x589   : > { %v1938_v40 = vrot.slane %v1934_v37, %v3764_v16  ;;  %2053 = vperm.xlu0 %3111, %v4147_v36   ;;  %v2020_v4 = vrot.slane %v2016_v38, %v3764_v16  ;;  %v4678_v37 = vmov 0  ;;  %v4680_v38 = vmov 0 }
 0x58b   : > { %vm4154_vm10 = vcmp.eq.s32.totalorder %v1938_v40, %v4138_v1  ;;  %vm4159_vm11 = vcmp.eq.s32.totalorder %v2020_v4, %v4138_v1 }
 0x58c   : > { %v4655_v42 = vsel %vm4159_vm11, 4294967295, %v4654_v42  ;;  %v1948_v43 = vpop.permute.xlu1 %1947 }
 0x58d   : > { %v1952_v44 = vrot.slane %v1948_v43, %v3764_v16  ;;  %3113 = vset.pattern.permute.xlu0 %v3471_v9  ;;  %v2130_v45 = vpop.permute.xlu0 %2129 }
 0x58e   : > { %2181 = vperm.xlu0 %3113, %v4147_v36   ;;  %v2134_v46 = vrot.slane %v2130_v45, %v3764_v16 }
 0x58f   : > { %vm4169_vm12 = vcmp.eq.s32.totalorder %v1952_v44, %v4138_v1  ;;  %v3175_v45 = vpop.eup %3174 }
 0x590   : > { %v4657_v49 = vsel %vm4169_vm12, 4294967295, %v4656_v49  ;;  %v1955_v53 = vpop.permute.xlu1 %1954  ;;  %vm4174_vm13 = vcmp.eq.s32.totalorder %v2134_v46, %v4138_v1 }
 0x591   : > { %v1959_v60 = vrot.slane %v1955_v53, %v3764_v16  ;;  %v2151_v15 = vpop.permute.xlu0 %2150 }
 0x592   : > { %3115 = vset.pattern.permute.xlu0 %v3473_v12  ;;  %v2155_v62 = vrot.slane %v2151_v15, %v3764_v16 }
 0x593   : > { %2309 = vperm.xlu0 %3115, %v4147_v36   ;;  %vm4183_vm14 = vcmp.eq.s32.totalorder %v1959_v60, %v4138_v1 }
 0x594   : > { %v2002_v39 = vpop.permute.xlu1 %2001  ;;  %vm4188_vm15 = vcmp.eq.s32.totalorder %v2155_v62, %v4138_v1 }
 0x595   : > { %v2006_v5 = vrot.slane %v2002_v39, %v3764_v16  ;;  %v4282_v39 = vmul.f32 %v3175_v45, %v4038_v0 }
 0x596   : > { %v2201_v6 = vpop.permute.xlu0 %2200 }
 0x597   : > { %3117 = vset.pattern.permute.xlu0 %v3476_v17  ;;  %v2205_v51 = vrot.slane %v2201_v6, %v3764_v16  ;;  %vm4196_vm0 = vcmp.eq.s32.totalorder %v2006_v5, %v4138_v1  ;;  %v4686_v5 = vmov 0  ;;  %v4688_v6 = vmov 0 }
 0x598   : > { %1974 = vperm.xlu1 %3103, %v4128_v30   ;;  %v2009_v18 = vpop.permute.xlu1 %2008  ;;  %2437 = vperm.xlu0 %3117, %v4147_v36  }
 0x599   : > { %v2013_v19 = vrot.slane %v2009_v18, %v3764_v16  ;;  %vm4204_vm1 = vcmp.eq.s32.totalorder %v2205_v51, %v4138_v1 }
 0x59a   : > { %v4667_v20 = vsel %vm4204_vm1, 4294967295, %v4666_v20 }
 0x59b   : > { %v2258_v22 = vpop.permute.xlu0 %2257  ;;  %vm4212_vm2 = vcmp.eq.s32.totalorder %v2013_v19, %v4138_v1  ;;  %v4690_v19 = vmov 0 }
 0x59c   : > { %v4669_v23 = vsel %vm4212_vm2, 4294967295, %v4668_v23  ;;  %3104 = vset.pattern.permute.xlu1 %v3470_v8  ;;  %v2023_v24 = vpop.permute.xlu1 %2022  ;;  %3119 = vset.pattern.permute.xlu0 %v3470_v8  ;;  %v2262_v25 = vrot.slane %v2258_v22, %v3764_v16  ;;  %v4692_v22 = vmov 0 }
 0x59d   : > { %v2027_v26 = vrot.slane %v2023_v24, %v3764_v16  ;;  %2041 = vperm.xlu1 %3104, %v4128_v30   ;;  %2045 = vperm.xlu0 %3119, %v4209_v21  }
 0x59e   : > { %vm4223_vm3 = vcmp.eq.s32.totalorder %v2262_v25, %v4138_v1 }
 0x59f   : > { %v2279_v61 = vpop.permute.xlu0 %2278  ;;  %vm4228_vm4 = vcmp.eq.s32.totalorder %v2027_v26, %v4138_v1 }
 0x5a0   : > { %v2283_v29 = vrot.slane %v2279_v61, %v3764_v16 }
 0x5a1   : > { %3105 = vset.pattern.permute.xlu1 %v3471_v9  ;;  %v2066_v27 = vpop.permute.xlu1 %2065  ;;  %3121 = vset.pattern.permute.xlu0 %v3471_v9 }
 0x5a2   : > { %v2070_v56 = vrot.slane %v2066_v27, %v3764_v16  ;;  %2169 = vperm.xlu1 %3105, %v4128_v30   ;;  %2173 = vperm.xlu0 %3121, %v4209_v21   ;;  %vm4239_vm5 = vcmp.eq.s32.totalorder %v2283_v29, %v4138_v1  ;;  %v4696_v27 = vmov 0 }
 0x5a3   : > { %v4675_v28 = vsel %vm4239_vm5, 4294967295, %v4674_v28 }
 0x5a4   : > { %v2329_v57 = vpop.permute.xlu0 %2328  ;;  %vm4244_vm6 = vcmp.eq.s32.totalorder %v2070_v56, %v4138_v1 }
 0x5a5   : > { %v2080_v33 = vpop.permute.xlu1 %2079  ;;  %v2333_v31 = vrot.slane %v2329_v57, %v3764_v16  ;;  %v2757_v41 = vsel %vm4244_vm6, 1.0, %v3467_v32 }
 0x5a6   : > { %v2084_v34 = vrot.slane %v2080_v33, %v3764_v16  ;;  %3107 = vset.pattern.permute.xlu1 %v3473_v12  ;;  %3123 = vset.pattern.permute.xlu0 %v3473_v12 }
 0x5a7   : > { %2297 = vperm.xlu1 %3107, %v4128_v30   ;;  %2301 = vperm.xlu0 %3123, %v4209_v21   ;;  %vm4255_vm7 = vcmp.eq.s32.totalorder %v2333_v31, %v4138_v1 }
 0x5a8   : > { %v4679_v37 = vsel %vm4255_vm7, 4294967295, %v4678_v37  ;;  %vm4260_vm8 = vcmp.eq.s32.totalorder %v2084_v34, %v4138_v1 }
 0x5a9   : > { %v4681_v38 = vsel %vm4260_vm8, 4294967295, %v4680_v38  ;;  %v2087_v40 = vpop.permute.xlu1 %2086  ;;  %v2386_v4 = vpop.permute.xlu0 %2385 }
 0x5aa   : > { %v2091_v43 = vrot.slane %v2087_v40, %v3764_v16  ;;  %v2390_v44 = vrot.slane %v2386_v4, %v3764_v16  ;;  %v4700_v40 = vmov 0 }
 0x5ab   : > { %3108 = vset.pattern.permute.xlu1 %v3475_v14  ;;  %3124 = vset.pattern.permute.xlu0 %v3475_v14 }
 0x5ac   : > { %2361 = vperm.xlu1 %3108, %v4128_v30   ;;  %2365 = vperm.xlu0 %3124, %v4209_v21   ;;  %vm4271_vm11 = vcmp.eq.s32.totalorder %v2390_v44, %v4138_v1  ;;  %vm4276_vm8 = vcmp.eq.s32.totalorder %v2091_v43, %v4138_v1  ;;  %v4702_v43 = vmov 0 }
 0x5ad   : > { %v2407_v60 = vpop.permute.xlu0 %2406  ;;  %v2760_v54 = vsel %vm4276_vm8, 1.0, %v3467_v32 }
 0x5ae   : > { %v2137_v15 = vpop.permute.xlu1 %2136  ;;  %v2411_v62 = vrot.slane %v2407_v60, %v3764_v16  ;;  %v2752_v60 = vsel %vm4183_vm14, 1.0, %v3467_v32 }
 0x5af   : > { %v2141_v30 = vrot.slane %v2137_v15, %v3764_v16 }
 0x5b0   : > { %3110 = vset.pattern.permute.xlu1 %v3469_v55  ;;  %3128 = vset.pattern.permute.xlu0 %v3474_v13  ;;  %vm4288_vm12 = vcmp.eq.s32.totalorder %v2411_v62, %v4138_v1  ;;  %v4706_v62 = vmov 0 }
 0x5b1   : > { %v4687_v5 = vsel %vm4288_vm12, 4294967295, %v4686_v5  ;;  %2113 = vperm.xlu0 %3128, %v4282_v39   ;;  %1989 = vperm.xlu1 %3110, %v4147_v36   ;;  %vm4295_vm7 = vcmp.eq.s32.totalorder %v2141_v30, %v4138_v1 }
 0x5b2   : > { %v4689_v6 = vsel %vm4295_vm7, 4294967295, %v4688_v6  ;;  %v2144_v0 = vpop.permute.xlu1 %2143  ;;  %v2073_v51 = vpop.permute.xlu0 %2072 }
 0x5b3   : > { %v2148_v10 = vrot.slane %v2144_v0, %v3764_v16  ;;  %v2077_v18 = vrot.slane %v2073_v51, %v3764_v16  ;;  %vm4719_vm14 = vnez %v4689_v6 }
 0x5b5   : > { %3130 = vset.pattern.permute.xlu0 %v3472_v11  ;;  %3112 = vset.pattern.permute.xlu1 %v3474_v13  ;;  %vm4304_vm1 = vcmp.eq.s32.totalorder %v2077_v18, %v4138_v1  ;;  %vm4309_vm9 = vcmp.eq.s32.totalorder %v2148_v10, %v4138_v1 }
 0x5b6   : > { %v4691_v19 = vsel %vm4304_vm1, 4294967295, %v4690_v19  ;;  %v4693_v22 = vsel %vm4309_vm9, 4294967295, %v4692_v22  ;;  %2241 = vperm.xlu0 %3130, %v4282_v39   ;;  %2117 = vperm.xlu1 %3112, %v4147_v36  }
 0x5b7   : > { %v2194_v24 = vpop.permute.xlu1 %2193 }
 0x5b8   : > { %v2198_v25 = vrot.slane %v2194_v24, %v3764_v16 }
 0x5ba   : > { %3114 = vset.pattern.permute.xlu1 %v3472_v11  ;;  %vm4318_vm7 = vcmp.eq.s32.totalorder %v2198_v25, %v4138_v1  ;;  %3134 = vset.pattern.permute.xlu0 %v3469_v55 }
 0x5bb   : > { %v2208_v61 = vpop.permute.xlu1 %2207  ;;  %2245 = vperm.xlu1 %3114, %v4147_v36  }
 0x5bc   : > { %v2212_v29 = vrot.slane %v2208_v61, %v3764_v16 }
 0x5be   : > { %vm4326_vm9 = vcmp.eq.s32.totalorder %v2212_v29, %v4138_v1 }
 0x5bf   : > { %v4697_v27 = vsel %vm4326_vm9, 4294967295, %v4696_v27  ;;  %v2215_v56 = vpop.permute.xlu1 %2214  ;;  %3116 = vset.pattern.permute.xlu1 %v3475_v14 }
 0x5c0   : > { %v2219_v57 = vrot.slane %v2215_v56, %v3764_v16  ;;  %2373 = vperm.xlu1 %3116, %v4147_v36  }
 0x5c2   : > { %vm4334_vm1 = vcmp.eq.s32.totalorder %v2219_v57, %v4138_v1 }
 0x5c4   : > { %v2265_v31 = vpop.permute.xlu1 %2264  ;;  %3118 = vset.pattern.permute.xlu1 %v3469_v55 }
 0x5c5   : > { %v2269_v34 = vrot.slane %v2265_v31, %v3764_v16  ;;  %1979 = vperm.xlu1 %3118, %v4209_v21  }
 0x5c7   : > { %vm4342_vm9 = vcmp.eq.s32.totalorder %v2269_v34, %v4138_v1 }
 0x5c8   : > { %v4701_v40 = vsel %vm4342_vm9, 4294967295, %v4700_v40  ;;  %v2272_v4 = vpop.permute.xlu1 %2271 }
 0x5c9   : > { %v2276_v36 = vrot.slane %v2272_v4, %v3764_v16  ;;  %3120 = vset.pattern.permute.xlu1 %v3474_v13 }
 0x5ca   : > { %2109 = vperm.xlu1 %3120, %v4209_v21  }
 0x5cb   : > { %vm4350_vm2 = vcmp.eq.s32.totalorder %v2276_v36, %v4138_v1 }
 0x5cc   : > { %v4703_v43 = vsel %vm4350_vm2, 4294967295, %v4702_v43 }
 0x5cd   : > { %v2322_v44 = vpop.permute.xlu1 %2321 }
 0x5ce   : > { %v2326_v45 = vrot.slane %v2322_v44, %v3764_v16  ;;  %3122 = vset.pattern.permute.xlu1 %v3472_v11 }
 0x5cf   : > { %2237 = vperm.xlu1 %3122, %v4209_v21  }
 0x5d0   : > { %vm4358_vm9 = vcmp.eq.s32.totalorder %v2326_v45, %v4138_v1 }
 0x5d1   : > { %v2336_v13 = vpop.permute.xlu1 %2335 }
 0x5d2   : > { %v2340_v15 = vrot.slane %v2336_v13, %v3764_v16 }
 0x5d3   : > { %3125 = vset.pattern.permute.xlu1 %v3476_v17 }
 0x5d4   : > { %2429 = vperm.xlu1 %3125, %v4209_v21   ;;  %vm4366_vm2 = vcmp.eq.s32.totalorder %v2340_v15, %v4138_v1 }
 0x5d5   : > { %v4707_v62 = vsel %vm4366_vm2, 4294967295, %v4706_v62  ;;  %v2343_v11 = vpop.permute.xlu1 %2342 }
 0x5d6   : > { %v2347_v30 = vrot.slane %v2343_v11, %v3764_v16 }
 0x5d8   : > { %3126 = vset.pattern.permute.xlu1 %v3469_v55  ;;  %vm4373_vm12 = vcmp.eq.s32.totalorder %v2347_v30, %v4138_v1 }
 0x5d9   : > { %1984 = vperm.xlu1 %3126, %v4282_v39  }
 0x5da   : > { %v2393_v51 = vpop.permute.xlu1 %2392 }
 0x5db   : > { %v2397_v21 = vrot.slane %v2393_v51, %v3764_v16 }
 0x5dd   : > { %3127 = vset.pattern.permute.xlu1 %v3470_v8  ;;  %vm4381_vm5 = vcmp.eq.s32.totalorder %v2397_v21, %v4138_v1 }
 0x5de   : > { %v2400_v18 = vpop.permute.xlu1 %2399  ;;  %2049 = vperm.xlu1 %3127, %v4282_v39  }
 0x5df   : > { %v2404_v24 = vrot.slane %v2400_v18, %v3764_v16  ;;  %v1699_v25 = vpop.xlane.xlu0 %1698 }
 0x5e0   : > { %v1705_v61 = vsub.f32 %v4021_v47, %v1699_v25 }
 0x5e1   : > { %vm4389_vm2 = vcmp.eq.s32.totalorder %v2404_v24, %v4138_v1 }
 0x5e2   : > { %v1710_v56 = vmul.f32 1.442695, %v1705_v61  ;;  %3129 = vset.pattern.permute.xlu1 %v3471_v9 }
 0x5e3   : > { %2177 = vperm.xlu1 %3129, %v4282_v39   ;;  %v1703_v8 = vpop.xlane.xlu0 %1702 }
 0x5e4   : > { %3176 = vpow2.f32 %v1710_v56  ;;  %v1707_v57 = vsub.f32 %v4029_v50, %v1703_v8 }
 0x5e6   : > { %v1714_v31 = vmul.f32 1.442695, %v1707_v57 }
 0x5e7   : > { %3131 = vset.pattern.permute.xlu1 %v3473_v12  ;;  %v1782_v12 = vstv %s1781_s28 }
 0x5e8   : > { %3178 = vpow2.f32 %v1714_v31  ;;  %2305 = vperm.xlu1 %3131, %v4282_v39  }
 0x5eb   : > { %v2106_v44 = vpop.permute.xlu0 %2105 }
 0x5ec   : > { %3132 = vset.pattern.permute.xlu1 %v3475_v14  ;;  %v2120_v57 = vmul.f32 %v2757_v41, %v2106_v44 }
 0x5ed   : > { %2369 = vperm.xlu1 %3132, %v4282_v39  }
 0x5ee   : > { %v4400_v16 = vpop.eup %3176 }
 0x5ef   : > { %1718 = vadd.xlane.f32.xlu0 %v4400_v16 }
 0x5f0   : > { %v2234_v30 = vpop.permute.xlu0 %2233 }
 0x5f1   : > { %3133 = vset.pattern.permute.xlu1 %v3476_v17 }
 0x5f2   : > { %v4404_v47 = vpop.eup %3178  ;;  %2433 = vperm.xlu1 %3133, %v4282_v39  }
 0x5f3   : > { %1722 = vadd.xlane.f32.xlu0 %v4404_v47 }
 0x5f6   : > { %3135 = vset.pattern.permute.xlu1 %v3469_v55  ;;  %v2749_v55 = vsel %vm4154_vm10, 1.0, %v3467_v32  ;;  %vm4715_vm10 = vnez %v4687_v5 }
 0x610   : > { %v1697_v50 = vpop.xlane.xlu1 %1696 }
 0x611   : > { %v1704_v9 = vsub.f32 %v4026_v48, %v1697_v50 }
 0x613   : > { %v1708_v14 = vmul.f32 1.442695, %v1704_v9  ;;  %v2929_v1 = vpop.f32.mrb[6].mxu0 }
 0x614   : > { %v1868_v34 = vadd.f32 %v2929_v1, %v1782_v12  ;;  %v1701_v4 = vpop.xlane.xlu1 %1700  ;;  %v1862_v36 = vpop.f32.mrb[7].mxu0 }
 0x615   : > { %3180 = vpow2.f32 %v1708_v14  ;;  %v1706_v17 = vsub.f32 %v4031_v52, %v1701_v4  ;;  %v1863_v45 = vadd.f32 %v1862_v36, %v1782_v12  ;;  %v2753_v52 = vsel %vm4196_vm0, 1.0, %v3467_v32  ;;  %v2426_v1 = vpop.permute.xlu0 %2425 }
 0x616   : > { %v2745_v39 = vmul.f32 -1.442695, %v1868_v34  ;;  %v2765_v4 = vsel %vm4318_vm7, 1.0, %v3467_v32  ;;  %vm4722_vm0 = vnez %v4701_v40 }
 0x617   : > { %v1712_v13 = vmul.f32 1.442695, %v1706_v17  ;;  %v2744_v15 = vmul.f32 -1.442695, %v1863_v45  ;;  %v2248_v17 = vmul.f32 %v2765_v4, %v2234_v30  ;;  %v2773_v30 = vsel %vm4358_vm9, 1.0, %v3467_v32 }
 0x618   : > { %3182 = vpow2.f32 %v2745_v39  ;;  %v1975_v48 = vpop.permute.xlu1 %1974  ;;  %v2764_v4 = vsel %vm4188_vm15, 1.0, %v3467_v32  ;;  %vm4714_vm9 = vnez %v4675_v28  ;;  %vm4720_vm15 = vnez %v4667_v20 }
 0x619   : > { %3184 = vpow2.f32 %v1712_v13  ;;  %v1992_v11 = vmul.f32 %v2749_v55, %v1975_v48  ;;  %v2054_v13 = vpop.permute.xlu0 %2053  ;;  %v2769_v55 = vsel %vm4223_vm3, 1.0, %v3467_v32  ;;  %v2772_v2 = vsel %vm4714_vm9, 1.0, %v3467_v32 }
 0x61a   : > { %3186 = vpow2.f32 %v2744_v15  ;;  %v2770_v6 = vsel %vm4722_vm0, 1.0, %v3467_v32 }
 0x61b   : > { %v2932_v51 = vpop.f32.mrb[8].mxu0 }
 0x61c   : > { %v1878_v21 = vadd.f32 %v2932_v51, %v1782_v12  ;;  %v2042_v18 = vpop.permute.xlu1 %2041  ;;  %v1872_v24 = vpop.f32.mrb[9].mxu0 }
 0x61d   : > { %v2056_v25 = vmul.f32 %v2753_v52, %v2042_v18  ;;  %v1873_v61 = vadd.f32 %v1872_v24, %v1782_v12  ;;  %v2761_v12 = vsel %vm4174_vm13, 1.0, %v3467_v32  ;;  %v2182_v52 = vpop.permute.xlu0 %2181  ;;  %vm4718_vm13 = vnez %v4691_v19 }
 0x61e   : > { %v2747_v56 = vmul.f32 -1.442695, %v1878_v21 }
 0x61f   : > { %v4420_v8 = vpop.eup %3180  ;;  %v2060_v31 = vadd.f32 %v2056_v25, %v1992_v11  ;;  %v2746_v50 = vmul.f32 -1.442695, %v1873_v61  ;;  %v2777_v25 = vsel %vm4271_vm11, 1.0, %v3467_v32  ;;  %vm4716_vm11 = vnez %v4669_v23 }
 0x620   : > { %3188 = vpow2.f32 %v2747_v56  ;;  %1716 = vadd.xlane.f32.xlu1 %v4420_v8  ;;  %v2440_v61 = vmul.f32 %v2777_v25, %v2426_v1  ;;  %v2758_v23 = vsel %vm4718_vm13, 1.0, %v3467_v32 }
 0x621   : > { %3190 = vpow2.f32 %v2746_v50  ;;  %v2170_v7 = vpop.permute.xlu1 %2169  ;;  %v2124_v9 = vadd.f32 %v2120_v57, %v2060_v31  ;;  %v2756_v57 = vsel %vm4228_vm4, 1.0, %v3467_v32 }
 0x622   : > { %v3183_v14 = vpop.eup %3182  ;;  %v2184_v58 = vmul.f32 %v2761_v12, %v2170_v7  ;;  %v2059_v46 = vmul.f32 %v2756_v57, %v2054_v13  ;;  %v2310_v12 = vpop.permute.xlu0 %2309 }
 0x623   : > { %v4426_v34 = vpop.eup %3184  ;;  %v1894_v36 = vadd.f32 1.0, %v3183_v14 }
 0x624   : > { %v3187_v44 = vpop.eup %3186  ;;  %v2188_v45 = vadd.f32 %v2184_v58, %v2124_v9  ;;  %1720 = vadd.xlane.f32.xlu1 %v4426_v34 }
 0x625   : > { %3192 = vrcp.f32 %v1894_v36  ;;  %v1893_v39 = vadd.f32 1.0, %v3187_v44 }
 0x626   : > { %v2298_v59 = vpop.permute.xlu1 %2297  ;;  %v2252_v15 = vadd.f32 %v2248_v17, %v2188_v45  ;;  %v2187_v17 = vmul.f32 %v2764_v4, %v2182_v52  ;;  %v2438_v45 = vpop.permute.xlu0 %2437 }
 0x627   : > { %3194 = vrcp.f32 %v1893_v39  ;;  %v2312_v48 = vmul.f32 %v2769_v55, %v2298_v59  ;;  %v2768_v59 = vsel %vm4334_vm1, 1.0, %v3467_v32 }
 0x629   : > { %v2316_v11 = vadd.f32 %v2312_v48, %v2252_v15 }
 0x62a   : > { %v3189_v26 = vpop.eup %3188 }
 0x62b   : > { %v3191_v51 = vpop.eup %3190  ;;  %v2362_v21 = vpop.permute.xlu1 %2361  ;;  %v1896_v3 = vadd.f32 1.0, %v3189_v26 }
 0x62c   : > { %v1895_v18 = vadd.f32 1.0, %v3191_v51  ;;  %v2376_v24 = vmul.f32 %v2773_v30, %v2362_v21  ;;  %v2046_v51 = vpop.permute.xlu0 %2045  ;;  %v2776_v30 = vsel %vm4373_vm12, 1.0, %v3467_v32  ;;  %vm4717_vm12 = vnez %v4651_v35 }
 0x62d   : > { %v2750_v0 = vsel %vm4717_vm12, 1.0, %v3467_v32  ;;  %v2762_v35 = vsel %vm4719_vm14, 1.0, %v3467_v32 }
 0x62e   : > { %3196 = vrcp.f32 %v1895_v18  ;;  %v2380_v41 = vadd.f32 %v2376_v24, %v2316_v11  ;;  %v2315_v11 = vmul.f32 %v2772_v2, %v2310_v12  ;;  %v2780_v18 = vsel %vm4715_vm10, 1.0, %v3467_v32 }
 0x62f   : > { %v3193_v56 = vpop.eup %3192  ;;  %3198 = vrcp.f32 %v1896_v3  ;;  %v2443_v24 = vmul.f32 %v2780_v18, %v2438_v45 }
 0x630   : > { %v1990_v31 = vpop.permute.xlu1 %1989  ;;  %2455 = vperm.xlu0 %3134, %v3193_v56   ;;  %v4447_v50 = vadd.f32 %v2440_v61, %v2380_v41  ;;  %v2473_v36 = vsub.f32 1.0, %v3193_v56  ;;  %v2754_v61 = vsel %vm4716_vm11, 1.0, %v3467_v32  ;;  %v2174_v3 = vpop.permute.xlu0 %2173 }
 0x631   : > { %v3195_v7 = vpop.eup %3194  ;;  %v1995_v9 = vmul.f32 %v2752_v60, %v1990_v31  ;;  %v2057_v57 = vmul.f32 %v2754_v61, %v2046_v51 }
 0x632   : > { %v2472_v14 = vsub.f32 1.0, %v3195_v7 }
 0x633   : > { %v2063_v1 = vadd.f32 %v2059_v46, %v1995_v9  ;;  %v2185_v9 = vmul.f32 %v2762_v35, %v2174_v3 }
 0x634   : > { %2478 = vperm.xlu0 %3134, %v2472_v14  }
 0x635   : > { %2450 = vperm.xlu1 %3135, %v3195_v7   ;;  %v2118_v58 = vpop.permute.xlu1 %2117  ;;  %v2302_v7 = vpop.permute.xlu0 %2301 }
 0x636   : > { %v2123_v63 = vmul.f32 %v2760_v54, %v2118_v58  ;;  %v2766_v54 = vsel %vm4720_vm15, 1.0, %v3467_v32 }
 0x638   : > { %v3197_v44 = vpop.eup %3196  ;;  %v2127_v39 = vadd.f32 %v2123_v63, %v2063_v1 }
 0x639   : > { %2483 = vperm.xlu1 %3135, %v2473_v36   ;;  %v2474_v13 = vsub.f32 1.0, %v3197_v44  ;;  %v3199_v48 = vpop.eup %3198  ;;  %v2366_v58 = vpop.permute.xlu0 %2365 }
 0x63a   : > { %v2246_v15 = vpop.permute.xlu1 %2245  ;;  %v2191_v53 = vadd.f32 %v2187_v17, %v2127_v39  ;;  %v2475_v28 = vsub.f32 1.0, %v3199_v48 }
 0x63b   : > { %v2251_v55 = vmul.f32 %v2768_v59, %v2246_v15  ;;  %2488 = vperm.xlu0 %3134, %v2474_v13  }
 0x63d   : > { %v2255_v26 = vadd.f32 %v2251_v55, %v2191_v53  ;;  %2465 = vperm.xlu1 %3135, %v3199_v48  }
 0x63f   : > { %v2374_v21 = vpop.permute.xlu1 %2373  ;;  %v2319_v33 = vadd.f32 %v2315_v11, %v2255_v26 }
 0x640   : > { %v2379_v52 = vmul.f32 %v2776_v30, %v2374_v21 }
 0x641   : > { %2460 = vperm.xlu1 %3135, %v3197_v44  }
 0x642   : > { %v2383_v25 = vadd.f32 %v2379_v52, %v2319_v33 }
 0x644   : > { %v1980_v41 = vpop.permute.xlu1 %1979  ;;  %v4473_v56 = vadd.f32 %v2443_v24, %v2383_v25 }
 0x645   : > { %v1993_v5 = vmul.f32 %v2750_v0, %v1980_v41  ;;  %2493 = vperm.xlu1 %3135, %v2475_v28  }
 0x647   : > { %v2061_v60 = vadd.f32 %v2057_v57, %v1993_v5 }
 0x649   : > { %v2110_v31 = vpop.permute.xlu1 %2109 }
 0x64a   : > { %v2121_v46 = vmul.f32 %v2758_v23, %v2110_v31 }
 0x64c   : > { %v2125_v12 = vadd.f32 %v2121_v46, %v2061_v60 }
 0x64e   : > { %v2238_v14 = vpop.permute.xlu1 %2237  ;;  %v2189_v1 = vadd.f32 %v2185_v9, %v2125_v12 }
 0x64f   : > { %v2249_v19 = vmul.f32 %v2766_v54, %v2238_v14 }
 0x650   : > { %3361 = shalt.err (!%p3358_p3)
}
 0x651   : > { %s3362_s21 = scalar_lea.hbm %s4488_s16, 64  ;;  %s3366_s28 = scalar_lea.hbm %s4721_s2, 128 }
 0x652   : > { %p3363_p6 = scmp.ne.s32.totalorder %s4488_s16, %s3362_s21  ;;  %p3367_p11 = scmp.lt.u32.totalorder %s4488_s16, %s4721_s2 }
 0x653   : > { %p3368_p12 = scmp.lt.u32.totalorder %s3366_s28, %s3362_s21  ;;  %p3370_p8 = scmp.lt.u32.totalorder %s3362_s21, %s4488_s16 }
 0x654   : > { %p3364_p5 = pnand %p3363_p6, %p4723_p7 }
 0x655   : > { %p3369_p4 = por %p3368_p12, %p3367_p11 }
 0x656   : > { %p3365_p10 = pneg %p3364_p5 }
 0x657   : > { %p3371_p9 = por %p3370_p8, %p3369_p4 }
 0x659   : > { %p3372_p13 = pnand %p3371_p9, %p3365_p10 }
 0x65b   : > { %3375 = shalt.err (!%p3372_p13)
}
 0x65c   : > { %2994 = dma.vmem_to_hbm [thread:$0]  (%p4723_p7), %s4491_s30, 64, %s4488_s16, %s2514_s18   ;;  %v2313_v20 = vmul.f32 %v2770_v6, %v2302_v7  ;;  %v2253_v40 = vadd.f32 %v2249_v19, %v2189_v1  ;;  %vm4724_vm1 = vnez %v4679_v37  ;;  %v2778_v44 = vsel %vm4381_vm5, 1.0, %v3467_v32  ;;  %v2430_v17 = vpop.permute.xlu1 %2429  ;;  %v2114_v15 = vpop.permute.xlu0 %2113 }
 0x65d   : > { %v2774_v63 = vsel %vm4724_vm1, 1.0, %v3467_v32  ;;  %v2441_v45 = vmul.f32 %v2778_v44, %v2430_v17  ;;  %vm4725_vm3 = vnez %v4657_v49  ;;  %vm4726_vm4 = vnez %v4655_v42  ;;  %s527_s20 = scalar_lea.vmem [#allocation13], %s2700_s27  ;;  %s2783_s30 = sshll.u32 %s3571_s10, 7 }
 0x65e   : > { %v2377_v4 = vmul.f32 %v2774_v63, %v2366_v58  ;;  %v2317_v36 = vadd.f32 %v2313_v20, %v2253_v40  ;;  %v2751_v53 = vsel %vm4725_vm3, 1.0, %v3467_v32  ;;  %v2755_v37 = vsel %vm4726_vm4, 1.0, %v3467_v32  ;;  %s2526_s16 = sshll.u32 %s527_s20, 4  ;;  %s4732_s22 = sld [smem:[#allocation26_spill]]  ;;  %s4556_s16 = int_to_ptr.vmem [resolvable:$true] %s2526_s16 }
 0x65f   : > { %vm4727_vm5 = vnez %v4681_v38  ;;  %vm4728_vm6 = vnez %v4693_v22  ;;  %vm4729_vm7 = vnez %v4697_v27  ;;  %vm4730_vm8 = vnez %v4703_v43  ;;  %s2509_s13 = scalar_lea.sflag [#allocation6], %s3739_s14  ;;  %s3376_s17 = scalar_lea.vmem %s4556_s16, 512 }
 0x660   : > { %v2381_v39 = vadd.f32 %v2377_v4, %v2317_v36  ;;  %v1985_v59 = vpop.permute.xlu1 %1984  ;;  %v2759_v10 = vsel %vm4727_vm5, 1.0, %v3467_v32  ;;  %v2242_v51 = vpop.permute.xlu0 %2241  ;;  %v2763_v30 = vsel %vm4728_vm6, 1.0, %v3467_v32  ;;  %v2767_v42 = vsel %vm4729_vm7, 1.0, %v3467_v32  ;;  %p3377_p2 = scmp.ne.s32.totalorder %s4556_s16, %s3376_s17  ;;  %s3478_s10 = smov [#allocation13]  }
 0x661   : > { %v1994_v48 = vmul.f32 %v2751_v53, %v1985_v59  ;;  %v2122_v11 = vmul.f32 %v2759_v10, %v2114_v15  ;;  %v2250_v52 = vmul.f32 %v2767_v42, %v2242_v51  ;;  %v2771_v38 = vsel %vm4730_vm8, 1.0, %v3467_v32  ;;  %s3380_s21 = sshll.u32 %s3478_s10, 4  ;;  %s3381_s21 = int_to_ptr.vmem [resolvable:$false] %s3380_s21 }
 0x662   : > { %v2445_v13 = vadd.f32 %v2441_v45, %v2381_v39  ;;  %vm4731_vm9 = vnez %v4707_v62  ;;  %v2779_v27 = vsel %vm4389_vm2, 1.0, %v3467_v32  ;;  %p3378_p0 = pnand %p3377_p2, %p4723_p7  ;;  %s3382_s19 = scalar_lea.vmem %s3381_s21, 1024 }
 0x663   : > { %v2775_v22 = vsel %vm4731_vm9, 1.0, %v3467_v32  ;;  %p3383_p6 = scmp.lt.s32.totalorder %s4556_s16, %s3381_s21  ;;  %p3384_p5 = scmp.lt.s32.totalorder %s3382_s19, %s3376_s17 }
 0x664   : > { %v2050_v55 = vpop.permute.xlu1 %2049  ;;  %s4562_s23 = scalar_lea.hbm %s4732_s22, %s2783_s30  ;;  %p3379_p3 = pneg %p3378_p0 }
 0x665   : > { %v2058_v2 = vmul.f32 %v2755_v37, %v2050_v55  ;;  %p3385_p10 = por %p3384_p5, %p3383_p6 }
 0x667   : > { %v2062_v26 = vadd.f32 %v2058_v2, %v1994_v48  ;;  %p3386_p11 = pnand %p3385_p10, %p3379_p3 }
 0x668   : > { %v2178_v49 = vpop.permute.xlu1 %2177 }
 0x669   : > { %v2126_v21 = vadd.f32 %v2122_v11, %v2062_v26  ;;  %v2186_v33 = vmul.f32 %v2763_v30, %v2178_v49 }
 0x66b   : > { %v2190_v18 = vadd.f32 %v2186_v33, %v2126_v21 }
 0x66c   : > { %v2306_v24 = vpop.permute.xlu1 %2305 }
 0x66d   : > { %v2254_v25 = vadd.f32 %v2250_v52, %v2190_v18  ;;  %v2314_v28 = vmul.f32 %v2771_v38, %v2306_v24 }
 0x66f   : > { %v2318_v61 = vadd.f32 %v2314_v28, %v2254_v25 }
 0x670   : > { %v2370_v3 = vpop.permute.xlu1 %2369 }
 0x671   : > { %v2378_v41 = vmul.f32 %v2775_v22, %v2370_v3 }
 0x673   : > { %v2382_v0 = vadd.f32 %v2378_v41, %v2318_v61 }
 0x674   : > { %v2434_v57 = vpop.permute.xlu1 %2433 }
 0x675   : > { %v2442_v5 = vmul.f32 %v2779_v27, %v2434_v57 }
 0x677   : > { %v2446_v60 = vadd.f32 %v2442_v5, %v2382_v0 }
 0x67c   : > { %v1719_v43 = vpop.xlane.xlu0 %1718 }
 0x67d   : > { %3200 = vrcp.f32 %v1719_v43 }
 0x680   : > { %v1723_v23 = vpop.xlane.xlu0 %1722 }
 0x687   : > { %v3201_v62 = vpop.eup %3200 }
 0x688   : > { %v1729_v12 = vmul.f32 %v3201_v62, %v4400_v16 }
 0x6ad   : > { %v1717_v31 = vpop.xlane.xlu1 %1716 }
 0x6ae   : > { %3202 = vrcp.f32 %v1717_v31 }
 0x6af   : > { %v2456_v46 = vpop.permute.xlu0 %2455 }
 0x6b0   : > { %v2469_v1 = vmul.f32 %v2456_v46, %v1729_v12 }
 0x6b1   : > { %v1721_v7 = vpop.xlane.xlu1 %1720 }
 0x6b2   : > { %3204 = vrcp.f32 %v1721_v7 }
 0x6b3   : > { %3206 = vrcp.f32 %v1723_v23  ;;  %v2479_v29 = vpop.permute.xlu0 %2478 }
 0x6b4   : > { %v2496_v19 = vmul.f32 %v2479_v29, %v4447_v50 }
 0x6b5   : > { %v2451_v35 = vpop.permute.xlu1 %2450 }
 0x6b8   : > { %v3203_v9 = vpop.eup %3202 }
 0x6b9   : > { %v1728_v32 = vmul.f32 %v3203_v9, %v4420_v8  ;;  %v2484_v14 = vpop.permute.xlu1 %2483 }
 0x6ba   : > { %v2497_v54 = vmul.f32 %v2484_v14, %v2445_v13  ;;  %v2489_v4 = vpop.permute.xlu0 %2488 }
 0x6bb   : > { %v2468_v6 = vmul.f32 %v2451_v35, %v1728_v32  ;;  %v2498_v44 = vmul.f32 %v2489_v4, %v2446_v60 }
 0x6bc   : > { %v2501_v58 = vadd.f32 %v2497_v54, %v2469_v1  ;;  %v3205_v20 = vpop.eup %3204 }
 0x6bd   : > { %v2500_v40 = vadd.f32 %v2496_v19, %v2468_v6  ;;  %v2466_v63 = vpop.permute.xlu1 %2465  ;;  %v1730_v16 = vmul.f32 %v3205_v20, %v4426_v34  ;;  %v3207_v36 = vpop.eup %3206 }
 0x6be   : > { %2505 = vst [vmem:[%s527_s20 + $0x8] sm:$0xff] %v2501_v58  ;;  %v1731_v50 = vmul.f32 %v3207_v36, %v4404_v47 }
 0x6bf   : > { %2504 = vst [vmem:[%s527_s20] sm:$0xff] %v2500_v40 }
 0x6c0   : > { %v2471_v13 = vmul.f32 %v2466_v63, %v1731_v50 }
 0x6c1   : > { %v2461_v8 = vpop.permute.xlu1 %2460 }
 0x6c2   : > { %v2470_v17 = vmul.f32 %v2461_v8, %v1730_v16 }
 0x6c4   : > { %v2502_v45 = vadd.f32 %v2498_v44, %v2470_v17 }
 0x6c5   : > { %v2494_v39 = vpop.permute.xlu1 %2493 }
 0x6c6   : > { %2506 = vst [vmem:[%s527_s20 + $0x10] sm:$0xff] %v2502_v45  ;;  %v2499_v34 = vmul.f32 %v2494_v39, %v4473_v56 }
 0x6c8   : > { %v2503_v59 = vadd.f32 %v2499_v34, %v2471_v13 }
 0x6ca   : > { %2507 = vst [vmem:[%s527_s20 + $0x18] sm:$0xff] %v2503_v59 }
 0x6cb   : > { %3389 = shalt.err (!%p3386_p11)
}
 0x6cc   : > { %s3390_s29 = scalar_lea.hbm %s4562_s23, 512  ;;  %s3394_s12 = scalar_lea.hbm %s4732_s22, 1024 }
 0x6cd   : > { %p3391_p12 = scmp.ne.s32.totalorder %s4562_s23, %s3390_s29  ;;  %p3395_p9 = scmp.lt.u32.totalorder %s4562_s23, %s4732_s22 }
 0x6ce   : > { %p3396_p13 = scmp.lt.u32.totalorder %s3394_s12, %s3390_s29  ;;  %p3398_p0 = scmp.lt.u32.totalorder %s3390_s29, %s4562_s23 }
 0x6cf   : > { %p3392_p4 = pnand %p3391_p12, %p4723_p7 }
 0x6d0   : > { %p3397_p2 = por %p3396_p13, %p3395_p9 }
 0x6d1   : > { %p3393_p8 = pneg %p3392_p4 }
 0x6d2   : > { %p3399_p3 = por %p3398_p0, %p3397_p2 }
 0x6d4   : > { %p3400_p6 = pnand %p3399_p3, %p3393_p8 }
 0x6d6   : > { %3403 = shalt.err (!%p3400_p6)
}
 0x6d7   : > { %s3479_s27 = smov 128   ;;  %s3480_s18 = smov 256  }
 0x6d8   : > { %s3481_s17 = smov 8  }
 0x6d9   : > { %2993 = dma.vmem_to_hbm [thread:$0]  (%p4723_p7), %s4556_s16, 512, %s4562_s23, %s2509_s13, %s3479_s27, %s3480_s18, %s3481_s17  }
 0x6da PF: > { %s4733_s10 = sld [smem:[#allocation21_spill]]  ;;  %s4734_s21 = sld [smem:[#allocation24_spill]] }
 0x6e0   : > { %s2554_s19 = sand.u32 1, %s4733_s10   ;;  %p4735_p5 = scmp.ne.s32.totalorder %s4734_s21, 0 }
 0x6e1   : > { %s2555_s29 = scalar_lea.sflag [#allocation6], %s2554_s19 }
 0x6e2   : > { %p3014_p10 = pnand %p2696_p1, %p4735_p5 }
 0x6e4   : > { %3433 = dma.done.wait (!%p3014_p10), %s2555_s29, 512  }
 0x6e5   : > { %3435 = vsyncadd (!%p3014_p10), %s2555_s29, 4294966784  ;;  %s2564_s28 = scalar_lea.sflag [#allocation15], %s2554_s19 }
 0x6e6   : > { %3437 = dma.done.wait (!%p3014_p10), %s2564_s28, 64  }
 0x6e7   : > { %3439 = vsyncadd (!%p3014_p10), %s2564_s28, 4294967232  ;;  %s4736_s26 = sld [smem:[#allocation22_spill]]  ;;  %s4737_s15 = sld [smem:[#allocation23_spill]] }
 0x6e8   : > { %s4738_s23 = smov %s3446_s24  ;;  %s4739_s24 = smov %s3450_s25 }
 0x6ed   : > { %p30_p7 = scmp.ge.s32.totalorder %s4736_s26, 4   ;;  %s4740_s25 = smov %s4737_s15 }
 0x6ef   :  { %32 = sbr.rel (!%p30_p7) target bundleno = 13 (0xd), region = 180 }
 0x6f6   :  { %2569 = vsyncpa [#allocation5], 1 }
 0x6f7   :  { %2571 = vsyncpa [#allocation5 + $0x1], 1 }
 0x6f8   :  { %2572 = vsyncpa [#allocation8], 1 }
 0x6f9   :  { %2573 = vsyncpa [#allocation11], 1 }
 0x6fa   :  { %2574 = vsyncpa [#allocation6], 1 }
 0x6fb   :  { %2576 = vsyncpa [#allocation6 + $0x1], 1 }
 0x6fc   :  { %2577 = vsyncpa [#allocation15], 1 }
 0x6fd   :  { %2579 = vsyncpa [#allocation15 + $0x1], 1 }

</bundles_post_ra>
